<compile_context>
chip_gen: v7x
topology: tpu7x:2x2x1
jax: 0.10.0
libtpu: 0.0.40
codegen_flags: <defaults>
</compile_context>

<pallas_src>
import jax
import jax.numpy as jnp
import numpy as np
from jax.experimental import pallas as pl
from jax.experimental.pallas import tpu as pltpu


def _round_up(n, m):
    return ((n + m - 1) // m) * m


def _leaky_relu(x, slope=0.2):
    return jnp.where(x >= 0, x, slope * x)


def _sigmoid(x):
    # sigmoid(x) = 0.5*tanh(0.5*x) + 0.5 — keeps the transcendental on the
    # EUP slot instead of a full-precision VALU divide (relevant on v5e).
    return 0.5 * jnp.tanh(0.5 * x) + 0.5


def naive_decoder_kernel(x_ref, w1_ref, b1_ref, w2_ref, b2_ref,
                         w3_ref, b3_ref, out_ref):
    compute_dtype = w1_ref.dtype            # f32 or bf16 (MXU input dtype)
    x = x_ref[...].astype(compute_dtype)    # [tile_rows, pack*latent]
    b1 = b1_ref[...]                        # [1, pack*hidden]  (f32)
    b2 = b2_ref[...]                        # [1, pack*hidden]
    b3 = b3_ref[...]                        # [1, pack*output]

    # h = sigmoid(FC_hidden(x))
    h = jnp.dot(x, w1_ref[...], preferred_element_type=jnp.float32) + b1
    h = _sigmoid(h)
    # h = sigmoid(FC_hidden2(h))
    h = jnp.dot(h.astype(compute_dtype), w2_ref[...],
                preferred_element_type=jnp.float32) + b2
    h = _sigmoid(h)
    # h = LeakyReLU(FC_hidden2(h), 0.2)
    h = jnp.dot(h.astype(compute_dtype), w2_ref[...],
                preferred_element_type=jnp.float32) + b2
    h = _leaky_relu(h)
    # h = LeakyReLU(FC_hidden2(h), 0.2)
    h = jnp.dot(h.astype(compute_dtype), w2_ref[...],
                preferred_element_type=jnp.float32) + b2
    h = _leaky_relu(h)
    # x_hat = FC_output(h)
    out = jnp.dot(h.astype(compute_dtype), w3_ref[...],
                  preferred_element_type=jnp.float32) + b3
    out_ref[...] = out.astype(out_ref.dtype)


def naive_decoder(x, w1, b1, w2, b2, w3, b3, *,
                  pack=8, batch_rows=1024, param_dtype=None, out_dtype=None):
    """x: [B, latent]; weights pre-transposed to [in, out]; biases [out].

    pack:       samples packed per lane row (8 -> K=128 for v5e's 128-wide
                MXU; 16 -> K=256 for v6e/v7x's 256-wide MXU). Any value is
                numerically correct.
    batch_rows: packed rows per grid step (batch tile = pack*batch_rows
                samples).
    """
    B, latent_dim = x.shape
    hidden_dim = w1.shape[1]
    output_dim = w3.shape[1]

    param_dtype = jnp.dtype(param_dtype) if param_dtype is not None else x.dtype
    out_dtype = jnp.dtype(out_dtype) if out_dtype is not None else x.dtype

    # ---- sample packing: block-diagonal weights, tiled biases -------------
    eye = jnp.eye(pack, dtype=jnp.float32)
    w1p = jnp.kron(eye, w1.astype(jnp.float32)).astype(param_dtype)
    w2p = jnp.kron(eye, w2.astype(jnp.float32)).astype(param_dtype)
    w3p = jnp.kron(eye, w3.astype(jnp.float32)).astype(param_dtype)
    b1p = jnp.tile(b1.astype(jnp.float32), pack).reshape(1, pack * hidden_dim)
    b2p = jnp.tile(b2.astype(jnp.float32), pack).reshape(1, pack * hidden_dim)
    b3p = jnp.tile(b3.astype(jnp.float32), pack).reshape(1, pack * output_dim)

    # ---- batch tiling in packed rows ---------------------------------------
    R = pl.cdiv(B, pack)                      # packed rows needed
    if R <= batch_rows:
        R_pad = _round_up(R, 8)               # keep (8,128)-aligned blocks
        tile_rows = R_pad                     # single grid step
    else:
        tile_rows = max(8, (batch_rows // 8) * 8)
        R_pad = _round_up(R, tile_rows)

    B_pack = R_pad * pack
    if B_pack != B:
        # Zero rows; they only compute sigmoid(b1) etc. and are sliced off.
        x = jnp.pad(x, ((0, B_pack - B), (0, 0)))
    # Contiguous reshape (free): row r holds samples r*pack .. r*pack+pack-1.
    xp = x.reshape(R_pad, pack * latent_dim)

    in_w = pack * latent_dim
    hid_w = pack * hidden_dim
    out_w = pack * output_dim

    def const(shape):
        # Same full block every grid step -> weights stay resident in VMEM.
        return pl.BlockSpec(shape, lambda i: (0, 0))

    # VMEM footprint (default: 1024 rows, pack=8, f32): x tile 0.5 MiB + out
    # tile 2 MiB (each double-buffered) + ~1 MiB resident weights + a few MiB
    # of intermediate scratch — comfortably within the default scoped VMEM on
    # v5e/v6e/v7x.  Only if sweeping batch_rows far higher (esp. on v7x's
    # 64 MiB physical VMEM) set pltpu.CompilerParams(vmem_limit_bytes=...).
    out = pl.pallas_call(
        naive_decoder_kernel,
        out_shape=jax.ShapeDtypeStruct((R_pad, out_w), out_dtype),
        grid_spec=pl.GridSpec(
            grid=(R_pad // tile_rows,),
            in_specs=[
                pl.BlockSpec((tile_rows, in_w), lambda i: (i, 0)),
                const((in_w, hid_w)),
                const((1, hid_w)),
                const((hid_w, hid_w)),
                const((1, hid_w)),
                const((hid_w, out_w)),
                const((1, out_w)),
            ],
            out_specs=pl.BlockSpec((tile_rows, out_w), lambda i: (i, 0)),
        ),
        # "parallel" over the batch axis; harmless (no-op) on single-TC chips.
        # TODO(synk): on v7x sweep pltpu.CORE_PARALLEL here and confirm 2-TC
        # sharding in xprof; kept "parallel" for portability across generations.
        compiler_params=pltpu.CompilerParams(
            dimension_semantics=("parallel",)),
    )(xp, w1p, b1p, w2p, b2p, w3p, b3p)

    # (R_pad, pack*output) is the same contiguous buffer as (B_pack, output):
    # this reshape is free and there is no feature-dim slice at all.
    out = out.reshape(B_pack, output_dim)
    return out if B_pack == B else out[:B]


def init_linear(key, in_dim, out_dim):
    """Deterministic init mimicking PyTorch nn.Linear default (uniform ±1/sqrt(in)).
    Returns (W_transposed [in, out], b [out])."""
    kw, kb = jax.random.split(key)
    bound = 1.0 / np.sqrt(in_dim)
    w = jax.random.uniform(kw, (in_dim, out_dim), jnp.float32, -bound, bound)
    b = jax.random.uniform(kb, (out_dim,), jnp.float32, -bound, bound)
    return w, b


def reference_forward(x, w1, b1, w2, b2, w3, b3):
    h = jax.nn.sigmoid(x @ w1 + b1)
    h = jax.nn.sigmoid(h @ w2 + b2)
    h = _leaky_relu(h @ w2 + b2)
    h = _leaky_relu(h @ w2 + b2)
    return h @ w3 + b3


if __name__ == "__main__":
    # Shapes consistent with the module: latent=16, hidden=32, output=64.
    latent_dim, hidden_dim, output_dim = 16, 32, 64

    key = jax.random.PRNGKey(0)
    kx, k1, k2, k3, kx2 = jax.random.split(key, 5)

    w1, b1 = init_linear(k1, latent_dim, hidden_dim)
    w2, b2 = init_linear(k2, hidden_dim, hidden_dim)
    w3, b3 = init_linear(k3, hidden_dim, output_dim)

    # --- main check: batch 512 (single grid step, pack=8, f32 params) -------
    B = 512
    x = jax.random.normal(kx, (B, latent_dim), jnp.float32)
    out = jax.block_until_ready(naive_decoder(x, w1, b1, w2, b2, w3, b3))
    ref = reference_forward(x, w1, b1, w2, b2, w3, b3)
    np.testing.assert_allclose(np.asarray(out), np.asarray(ref),
                               rtol=1e-5, atol=1e-5)

    # --- multi-grid-step path (small batch_rows forces grid=4) --------------
    out_tiled = jax.block_until_ready(
        naive_decoder(x, w1, b1, w2, b2, w3, b3, batch_rows=16))
    np.testing.assert_allclose(np.asarray(out_tiled), np.asarray(ref),
                               rtol=1e-5, atol=1e-5)

    # --- ragged small batch exercises pack/row padding -----------------------
    x_small = jax.random.normal(kx2, (20, latent_dim), jnp.float32)
    out_small = jax.block_until_ready(
        naive_decoder(x_small, w1, b1, w2, b2, w3, b3))
    ref_small = reference_forward(x_small, w1, b1, w2, b2, w3, b3)
    np.testing.assert_allclose(np.asarray(out_small), np.asarray(ref_small),
                               rtol=1e-5, atol=1e-5)

    # --- pack=16 (K=256, matches v6e/v7x MXU) + bf16 weights; loose tolerance
    out_bf16 = jax.block_until_ready(
        naive_decoder(x, w1, b1, w2, b2, w3, b3,
                      pack=16, param_dtype=jnp.bfloat16))
    np.testing.assert_allclose(np.asarray(out_bf16), np.asarray(ref),
                               rtol=5e-2, atol=1e-1)

    print("KERNEL_OK")
</pallas_src>

<mosaic_0001>
module attributes {stable_mosaic.version = 11 : i64} {
  func.func @naive_decoder_kernel(%arg0: i32, %arg1: memref<64x128xf32, #tpu.memory_space<vmem>>, %arg2: memref<128x256xf32, #tpu.memory_space<vmem>>, %arg3: memref<1x256xf32, #tpu.memory_space<vmem>>, %arg4: memref<256x256xf32, #tpu.memory_space<vmem>>, %arg5: memref<1x256xf32, #tpu.memory_space<vmem>>, %arg6: memref<256x512xf32, #tpu.memory_space<vmem>>, %arg7: memref<1x512xf32, #tpu.memory_space<vmem>>, %arg8: memref<64x512xf32, #tpu.memory_space<vmem>>) attributes {dimension_semantics = [#tpu.dimension_semantics<parallel>], iteration_bounds = array<i64: 1>, scalar_prefetch = 0 : i64, scratch_operands = 0 : i64, tpu.core_type = #tpu.core_type<tc>, window_params = [{transform_indices = @transform_0, window_bounds = array<i64: 64, 128>}, {pipeline_mode = #tpu.pipeline_mode<synchronous>, transform_indices = @transform_1, window_bounds = array<i64: 128, 256>}, {pipeline_mode = #tpu.pipeline_mode<synchronous>, transform_indices = @transform_2, window_bounds = array<i64: 1, 256>}, {pipeline_mode = #tpu.pipeline_mode<synchronous>, transform_indices = @transform_3, window_bounds = array<i64: 256, 256>}, {pipeline_mode = #tpu.pipeline_mode<synchronous>, transform_indices = @transform_4, window_bounds = array<i64: 1, 256>}, {pipeline_mode = #tpu.pipeline_mode<synchronous>, transform_indices = @transform_5, window_bounds = array<i64: 256, 512>}, {pipeline_mode = #tpu.pipeline_mode<synchronous>, transform_indices = @transform_6, window_bounds = array<i64: 1, 512>}, {transform_indices = @transform_7, window_bounds = array<i64: 64, 512>}]} {
    %c0 = arith.constant 0 : index
    %c0_0 = arith.constant 0 : index
    %0 = vector.load %arg1[%c0, %c0_0] : memref<64x128xf32, #tpu.memory_space<vmem>>, vector<64x128xf32>
    %c0_1 = arith.constant 0 : index
    %c0_2 = arith.constant 0 : index
    %1 = vector.load %arg3[%c0_1, %c0_2] : memref<1x256xf32, #tpu.memory_space<vmem>>, vector<1x256xf32>
    %c0_3 = arith.constant 0 : index
    %c0_4 = arith.constant 0 : index
    %2 = vector.load %arg5[%c0_3, %c0_4] : memref<1x256xf32, #tpu.memory_space<vmem>>, vector<1x256xf32>
    %c0_5 = arith.constant 0 : index
    %c0_6 = arith.constant 0 : index
    %3 = vector.load %arg7[%c0_5, %c0_6] : memref<1x512xf32, #tpu.memory_space<vmem>>, vector<1x512xf32>
    %c0_7 = arith.constant 0 : index
    %c0_8 = arith.constant 0 : index
    %4 = vector.load %arg2[%c0_7, %c0_8] : memref<128x256xf32, #tpu.memory_space<vmem>>, vector<128x256xf32>
    %cst = arith.constant dense<0.000000e+00> : vector<64x256xf32>
    %5 = tpu.matmul %0, %4, %cst {dimension_numbers = #tpu.dot_dimension_numbers<[1], [0], [0], [1], [0, 0, 1, 1], [], []>} : vector<64x128xf32>, vector<128x256xf32>, vector<64x256xf32> -> vector<64x256xf32>
    %6 = vector.broadcast %1 : vector<1x256xf32> to vector<64x256xf32>
    %7 = arith.addf %5, %6 : vector<64x256xf32>
    %cst_9 = arith.constant 5.000000e-01 : f32
    %8 = vector.broadcast %cst_9 : f32 to vector<64x256xf32>
    %9 = arith.mulf %8, %7 : vector<64x256xf32>
    %10 = math.tanh %9 : vector<64x256xf32>
    %cst_10 = arith.constant 5.000000e-01 : f32
    %11 = vector.broadcast %cst_10 : f32 to vector<64x256xf32>
    %12 = arith.mulf %11, %10 : vector<64x256xf32>
    %cst_11 = arith.constant 5.000000e-01 : f32
    %13 = vector.broadcast %cst_11 : f32 to vector<64x256xf32>
    %14 = arith.addf %12, %13 : vector<64x256xf32>
    %c0_12 = arith.constant 0 : index
    %c0_13 = arith.constant 0 : index
    %15 = vector.load %arg4[%c0_12, %c0_13] : memref<256x256xf32, #tpu.memory_space<vmem>>, vector<256x256xf32>
    %cst_14 = arith.constant dense<0.000000e+00> : vector<64x256xf32>
    %16 = tpu.matmul %14, %15, %cst_14 {dimension_numbers = #tpu.dot_dimension_numbers<[1], [0], [0], [1], [0, 0, 1, 1], [], []>} : vector<64x256xf32>, vector<256x256xf32>, vector<64x256xf32> -> vector<64x256xf32>
    %17 = vector.broadcast %2 : vector<1x256xf32> to vector<64x256xf32>
    %18 = arith.addf %16, %17 : vector<64x256xf32>
    %cst_15 = arith.constant 5.000000e-01 : f32
    %19 = vector.broadcast %cst_15 : f32 to vector<64x256xf32>
    %20 = arith.mulf %19, %18 : vector<64x256xf32>
    %21 = math.tanh %20 : vector<64x256xf32>
    %cst_16 = arith.constant 5.000000e-01 : f32
    %22 = vector.broadcast %cst_16 : f32 to vector<64x256xf32>
    %23 = arith.mulf %22, %21 : vector<64x256xf32>
    %cst_17 = arith.constant 5.000000e-01 : f32
    %24 = vector.broadcast %cst_17 : f32 to vector<64x256xf32>
    %25 = arith.addf %23, %24 : vector<64x256xf32>
    %c0_18 = arith.constant 0 : index
    %c0_19 = arith.constant 0 : index
    %26 = vector.load %arg4[%c0_18, %c0_19] : memref<256x256xf32, #tpu.memory_space<vmem>>, vector<256x256xf32>
    %cst_20 = arith.constant dense<0.000000e+00> : vector<64x256xf32>
    %27 = tpu.matmul %25, %26, %cst_20 {dimension_numbers = #tpu.dot_dimension_numbers<[1], [0], [0], [1], [0, 0, 1, 1], [], []>} : vector<64x256xf32>, vector<256x256xf32>, vector<64x256xf32> -> vector<64x256xf32>
    %28 = vector.broadcast %2 : vector<1x256xf32> to vector<64x256xf32>
    %29 = arith.addf %27, %28 : vector<64x256xf32>
    %cst_21 = arith.constant 0.000000e+00 : f32
    %30 = vector.broadcast %cst_21 : f32 to vector<64x256xf32>
    %31 = arith.cmpf oge, %29, %30 : vector<64x256xf32>
    %cst_22 = arith.constant 2.000000e-01 : f32
    %32 = vector.broadcast %cst_22 : f32 to vector<64x256xf32>
    %33 = arith.mulf %32, %29 : vector<64x256xf32>
    %34 = arith.select %31, %29, %33 : vector<64x256xi1>, vector<64x256xf32>
    %c0_23 = arith.constant 0 : index
    %c0_24 = arith.constant 0 : index
    %35 = vector.load %arg4[%c0_23, %c0_24] : memref<256x256xf32, #tpu.memory_space<vmem>>, vector<256x256xf32>
    %cst_25 = arith.constant dense<0.000000e+00> : vector<64x256xf32>
    %36 = tpu.matmul %34, %35, %cst_25 {dimension_numbers = #tpu.dot_dimension_numbers<[1], [0], [0], [1], [0, 0, 1, 1], [], []>} : vector<64x256xf32>, vector<256x256xf32>, vector<64x256xf32> -> vector<64x256xf32>
    %37 = vector.broadcast %2 : vector<1x256xf32> to vector<64x256xf32>
    %38 = arith.addf %36, %37 : vector<64x256xf32>
    %cst_26 = arith.constant 0.000000e+00 : f32
    %39 = vector.broadcast %cst_26 : f32 to vector<64x256xf32>
    %40 = arith.cmpf oge, %38, %39 : vector<64x256xf32>
    %cst_27 = arith.constant 2.000000e-01 : f32
    %41 = vector.broadcast %cst_27 : f32 to vector<64x256xf32>
    %42 = arith.mulf %41, %38 : vector<64x256xf32>
    %43 = arith.select %40, %38, %42 : vector<64x256xi1>, vector<64x256xf32>
    %c0_28 = arith.constant 0 : index
    %c0_29 = arith.constant 0 : index
    %44 = vector.load %arg6[%c0_28, %c0_29] : memref<256x512xf32, #tpu.memory_space<vmem>>, vector<256x512xf32>
    %cst_30 = arith.constant dense<0.000000e+00> : vector<64x512xf32>
    %45 = tpu.matmul %43, %44, %cst_30 {dimension_numbers = #tpu.dot_dimension_numbers<[1], [0], [0], [1], [0, 0, 1, 1], [], []>} : vector<64x256xf32>, vector<256x512xf32>, vector<64x512xf32> -> vector<64x512xf32>
    %46 = vector.broadcast %3 : vector<1x512xf32> to vector<64x512xf32>
    %47 = arith.addf %45, %46 : vector<64x512xf32>
    %c0_31 = arith.constant 0 : index
    %c0_32 = arith.constant 0 : index
    %48 = vector.load %arg8[%c0_31, %c0_32] : memref<64x512xf32, #tpu.memory_space<vmem>>, vector<64x512xf32>
    tpu.vector_store %arg8[%c0_31, %c0_32], %47 {strides = array<i32>} : memref<64x512xf32, #tpu.memory_space<vmem>>, vector<64x512xf32>,
    return
  }
  func.func @transform_0(%arg0: i32) -> (i32, i32) {
    %c0_i32 = arith.constant 0 : i32
    %c0_i32_0 = arith.constant 0 : i32
    return %arg0, %c0_i32 : i32, i32
  }
  func.func @transform_1(%arg0: i32) -> (i32, i32) {
    %c0_i32 = arith.constant 0 : i32
    %c0_i32_0 = arith.constant 0 : i32
    %c0_i32_1 = arith.constant 0 : i32
    return %c0_i32, %c0_i32_0 : i32, i32
  }
  func.func @transform_2(%arg0: i32) -> (i32, i32) {
    %c0_i32 = arith.constant 0 : i32
    %c0_i32_0 = arith.constant 0 : i32
    %c0_i32_1 = arith.constant 0 : i32
    return %c0_i32, %c0_i32_0 : i32, i32
  }
  func.func @transform_3(%arg0: i32) -> (i32, i32) {
    %c0_i32 = arith.constant 0 : i32
    %c0_i32_0 = arith.constant 0 : i32
    %c0_i32_1 = arith.constant 0 : i32
    return %c0_i32, %c0_i32_0 : i32, i32
  }
  func.func @transform_4(%arg0: i32) -> (i32, i32) {
    %c0_i32 = arith.constant 0 : i32
    %c0_i32_0 = arith.constant 0 : i32
    %c0_i32_1 = arith.constant 0 : i32
    return %c0_i32, %c0_i32_0 : i32, i32
  }
  func.func @transform_5(%arg0: i32) -> (i32, i32) {
    %c0_i32 = arith.constant 0 : i32
    %c0_i32_0 = arith.constant 0 : i32
    %c0_i32_1 = arith.constant 0 : i32
    return %c0_i32, %c0_i32_0 : i32, i32
  }
  func.func @transform_6(%arg0: i32) -> (i32, i32) {
    %c0_i32 = arith.constant 0 : i32
    %c0_i32_0 = arith.constant 0 : i32
    %c0_i32_1 = arith.constant 0 : i32
    return %c0_i32, %c0_i32_0 : i32, i32
  }
  func.func @transform_7(%arg0: i32) -> (i32, i32) {
    %c0_i32 = arith.constant 0 : i32
    %c0_i32_0 = arith.constant 0 : i32
    return %arg0, %c0_i32 : i32, i32
  }
}

</mosaic_0001>

<bundles_post_ra>
// kernel: tpu_custom_call.1
= control target key start
LH: loop header
LB: loop body
LE: loop exit
PB: predicated region body
PF: predicated region fallthrough
CT: control target
= control target key end

     0   :  { %12 = vsyncpa [#allocation3], 0  ;;  %s2295_s0 = inlined_call_operand.hbm [shape: f32[64,128], index: 0, kind: input, shape index: {}]   ;;  %s2296_s1 = inlined_call_operand.hbm [shape: f32[128,256], index: 1, kind: input, shape index: {}]   ;;  %s2297_s2 = inlined_call_operand.vmem [shape: f32[1,256], index: 2, kind: input, shape index: {}]   ;;  %s2298_s3 = inlined_call_operand.hbm [shape: f32[256,256], index: 3, kind: input, shape index: {}]   ;;  %s2299_s4 = inlined_call_operand.vmem [shape: f32[1,256], index: 4, kind: input, shape index: {}]   ;;  %s2300_s5 = inlined_call_operand.hbm [shape: f32[256,512], index: 5, kind: input, shape index: {}]   ;;  %s2301_s6 = inlined_call_operand.vmem [shape: f32[1,512], index: 6, kind: input, shape index: {}]   ;;  %s2302_s7 = inlined_call_operand.hbm [shape: f32[64,512], index: 7, kind: output, shape index: {}]  }
   0x1   :  { %13 = vsyncpa [#allocation6], 0 }
   0x2   :  { %14 = vsyncpa [#allocation9], 0 }
   0x3   :  { %15 = vsyncpa [#allocation4], 0  ;;  %s1859_s24 = smov [#allocation5]   ;;  %s1741_s28 = scalar_lea.hbm %s2296_s1, 4096 }
   0x4   :  { %s33_s25 = sshll.u32 %s1859_s24, 4  ;;  %p1742_p0 = scmp.ne.s32.totalorder %s2296_s1, %s1741_s28  ;;  %s34_s25 = int_to_ptr.vmem [resolvable:$true] %s33_s25 }
   0x5   :  { %p1745_p1 = scmp.lt.u32.totalorder %s1741_s28, %s2296_s1 }
   0x7   :  { %p1747_p2 = pnand %p1745_p1, %p1742_p0 }
   0x9   :  { %1750 = shalt.err (!%p1747_p2)
}
   0xa   :  { %s1751_s10 = scalar_lea.vmem %s34_s25, 4096  ;;  %p1756_p4 = scmp.lt.s32.totalorder %s34_s25, %s34_s25 }
   0xb   :  { %p1752_p3 = scmp.ne.s32.totalorder %s34_s25, %s1751_s10  ;;  %p1757_p5 = scmp.lt.s32.totalorder %s1751_s10, %s1751_s10 }
   0xd   :  { %p1758_p6 = por %p1757_p5, %p1756_p4 }
   0xf   :  { %p1759_p7 = pnand %p1758_p6, %p1752_p3 }
  0x11   :  { %1762 = shalt.err (!%p1759_p7)
}
  0x12   :  { %s1860_s11 = smov 256   ;;  %s1861_s12 = smov 16  }
  0x13   :  { %39 = dma.hbm_to_vmem [thread:$0]  %s2296_s1, 4096, %s34_s25, [#allocation6], %s1860_s11, %s1860_s11, %s1861_s12  }
  0x14   :  { %s1862_s15 = smov [#allocation2]   ;;  %s1763_s19 = scalar_lea.hbm %s2295_s0, 1024 }
  0x15   :  { %s21_s16 = sshll.u32 %s1862_s15, 4  ;;  %p1764_p8 = scmp.ne.s32.totalorder %s2295_s0, %s1763_s19  ;;  %s22_s16 = int_to_ptr.vmem [resolvable:$true] %s21_s16 }
  0x16   :  { %p1767_p9 = scmp.lt.u32.totalorder %s1763_s19, %s2295_s0 }
  0x18   :  { %p1769_p10 = pnand %p1767_p9, %p1764_p8 }
  0x1a   :  { %1772 = shalt.err (!%p1769_p10)
}
  0x1b   :  { %s1773_s24 = scalar_lea.vmem %s22_s16, 1024  ;;  %p1778_p12 = scmp.lt.s32.totalorder %s22_s16, %s22_s16 }
  0x1c   :  { %p1774_p11 = scmp.ne.s32.totalorder %s22_s16, %s1773_s24  ;;  %p1779_p13 = scmp.lt.s32.totalorder %s1773_s24, %s1773_s24 }
  0x1e   :  { %p1780_p0 = por %p1779_p13, %p1778_p12 }
  0x20   :  { %p1781_p1 = pnand %p1780_p0, %p1774_p11 }
  0x22   :  { %1784 = shalt.err (!%p1781_p1)
}
  0x23   :  { %s1863_s1 = smov 128   ;;  %s1864_s25 = smov 8  }
  0x24   :  { %27 = dma.hbm_to_vmem [thread:$0]  %s2295_s0, 1024, %s22_s16, [#allocation3], %s1863_s1, %s1863_s1, %s1864_s25  }
  0x25   :  { %s1865_s28 = smov [#allocation7]   ;;  %s1866_s30 = smov [#allocation8]  }
  0x26   :  { %s47_s29 = sshll.u32 %s1865_s28, 4  ;;  %s61_s8 = sshll.u32 %s1866_s30, 4  ;;  %s48_s29 = int_to_ptr.vmem [resolvable:$true] %s47_s29  ;;  %s1938_s8 = int_to_ptr.vmem [resolvable:$true] %s61_s8 }
  0x27   :  { %s1785_s13 = scalar_lea.hbm %s2298_s3, 8192 }
  0x28   :  { %p1786_p2 = scmp.ne.s32.totalorder %s2298_s3, %s1785_s13  ;;  %p1789_p3 = scmp.lt.u32.totalorder %s1785_s13, %s2298_s3 }
  0x2a   :  { %p1791_p4 = pnand %p1789_p3, %p1786_p2 }
  0x2c   :  { %1794 = shalt.err (!%p1791_p4)
}
  0x2d   :  { %s1795_s0 = scalar_lea.vmem %s48_s29, 8192  ;;  %p1800_p6 = scmp.lt.s32.totalorder %s48_s29, %s48_s29 }
  0x2e   :  { %p1796_p5 = scmp.ne.s32.totalorder %s48_s29, %s1795_s0  ;;  %p1801_p7 = scmp.lt.s32.totalorder %s1795_s0, %s1795_s0 }
  0x30   :  { %p1802_p8 = por %p1801_p7, %p1800_p6 }
  0x32   :  { %p1803_p9 = pnand %p1802_p8, %p1796_p5 }
  0x34   :  { %1806 = shalt.err (!%p1803_p9)
}
  0x35   :  { %53 = dma.hbm_to_vmem [thread:$0]  %s2298_s3, 8192, %s48_s29, [#allocation6], %s1860_s11, %s1860_s11, %s1861_s12  }
  0x36   :  { %s1807_s22 = scalar_lea.hbm %s2300_s5, 16384 }
  0x37   :  { %p1808_p10 = scmp.ne.s32.totalorder %s2300_s5, %s1807_s22  ;;  %p1811_p11 = scmp.lt.u32.totalorder %s1807_s22, %s2300_s5 }
  0x39   :  { %p1813_p12 = pnand %p1811_p11, %p1808_p10 }
  0x3b   :  { %1816 = shalt.err (!%p1813_p12)
}
  0x3c   :  { %s1817_s26 = scalar_lea.vmem %s1938_s8, 16384  ;;  %p1822_p0 = scmp.lt.s32.totalorder %s1938_s8, %s1938_s8 }
  0x3d   :  { %p1818_p13 = scmp.ne.s32.totalorder %s1938_s8, %s1817_s26  ;;  %p1823_p1 = scmp.lt.s32.totalorder %s1817_s26, %s1817_s26 }
  0x3f   :  { %p1824_p2 = por %p1823_p1, %p1822_p0 }
  0x41   :  { %p1825_p3 = pnand %p1824_p2, %p1818_p13 }
  0x43   :  { %1828 = shalt.err (!%p1825_p3)
}
  0x44   :  { %s1867_s3 = smov 512   ;;  %s1868_s11 = smov 32  }
  0x45   :  { %67 = dma.hbm_to_vmem [thread:$0]  %s2300_s5, 16384, %s1938_s8, [#allocation9], %s1867_s3, %s1867_s3, %s1868_s11  }
  0x46   :  { %1851 = dma.done.wait [#allocation3], 1024  }
  0x47   :  { %1852 = vsyncadd [#allocation3], 4294966272 }
  0x48   :  { %1853 = dma.done.wait [#allocation6], 12288  }
  0x49   :  { %1854 = vsyncadd [#allocation6], 4294955008 }
  0x4a   :  { %1855 = dma.done.wait [#allocation9], 16384  }
  0x4b   :  { %1856 = vsyncadd [#allocation9], 4294950912  ;;  %v1869_v0 = vmov 0.0   ;;  %v94_v1 = vld [vmem:[#allocation5 + $0x8] sm:$0xff]  ;;  %v96_v2 = vld [vmem:[#allocation5 + $0x18] sm:$0xff] }
  0x4c   :  { %200 = vmatprep.mubr.f32.mxu0 %v1869_v0  ;;  %v93_v3 = vld [vmem:[#allocation5] sm:$0xff]  ;;  %v1313_v4 = vpack.c.bf16 %v96_v2, %v94_v1  ;;  %v95_v5 = vld [vmem:[#allocation5 + $0x10] sm:$0xff]  ;;  %v98_v6 = vld [vmem:[#allocation5 + $0x28] sm:$0xff] }
  0x4d   :  { %v100_v7 = vld [vmem:[#allocation5 + $0x38] sm:$0xff]  ;;  %v1315_v8 = vpack.c.bf16 %v95_v5, %v93_v3  ;;  %v97_v10 = vld [vmem:[#allocation5 + $0x20] sm:$0xff]  ;;  %v99_v11 = vld [vmem:[#allocation5 + $0x30] sm:$0xff] }
  0x4e   :  { %v1317_v9 = vpack.c.bf16 %v100_v7, %v98_v6  ;;  %v102_v12 = vld [vmem:[#allocation5 + $0x48] sm:$0xff]  ;;  %1314 = vmatprep.subr.bf16.mxu0 %v1313_v4  ;;  %v104_v13 = vld [vmem:[#allocation5 + $0x58] sm:$0xff]  ;;  %v1319_v14 = vpack.c.bf16 %v99_v11, %v97_v10  ;;  %v101_v16 = vld [vmem:[#allocation5 + $0x40] sm:$0xff] }
  0x4f   :  { %1316 = vmatpush1.bf16.msra.mxu0 %v1315_v8  ;;  %v1321_v15 = vpack.c.bf16 %v104_v13, %v102_v12  ;;  %v103_v17 = vld [vmem:[#allocation5 + $0x50] sm:$0xff]  ;;  %v106_v18 = vld [vmem:[#allocation5 + $0x68] sm:$0xff]  ;;  %v108_v19 = vld [vmem:[#allocation5 + $0x78] sm:$0xff] }
  0x50   :  { %1318 = vmatprep.subr.bf16.mxu0 %v1317_v9  ;;  %v1323_v20 = vpack.c.bf16 %v103_v17, %v101_v16  ;;  %v1325_v21 = vpack.c.bf16 %v108_v19, %v106_v18  ;;  %v105_v22 = vld [vmem:[#allocation5 + $0x60] sm:$0xff]  ;;  %v107_v23 = vld [vmem:[#allocation5 + $0x70] sm:$0xff]  ;;  %v110_v24 = vld [vmem:[#allocation5 + $0x88] sm:$0xff] }
  0x51   :  { %v112_v25 = vld [vmem:[#allocation5 + $0x98] sm:$0xff]  ;;  %v1327_v26 = vpack.c.bf16 %v107_v23, %v105_v22  ;;  %v109_v27 = vld [vmem:[#allocation5 + $0x80] sm:$0xff]  ;;  %v111_v28 = vld [vmem:[#allocation5 + $0x90] sm:$0xff] }
  0x52   :  { %v114_v29 = vld [vmem:[#allocation5 + $0xa8] sm:$0xff]  ;;  %v1329_v30 = vpack.c.bf16 %v112_v25, %v110_v24  ;;  %v116_v31 = vld [vmem:[#allocation5 + $0xb8] sm:$0xff]  ;;  %v313_v35 = vld [vmem:[#allocation7] sm:$0xff]  ;;  %v1331_v42 = vpack.c.bf16 %v111_v28, %v109_v27 }
  0x53   :  { %1320 = vmatpush1.bf16.msra.mxu0 %v1319_v14  ;;  %v314_v32 = vld [vmem:[#allocation7 + $0x8] sm:$0xff]  ;;  %v316_v33 = vld [vmem:[#allocation7 + $0x18] sm:$0xff]  ;;  %v315_v36 = vld [vmem:[#allocation7 + $0x10] sm:$0xff]  ;;  %v1333_v46 = vpack.c.bf16 %v116_v31, %v114_v29 }
  0x54   :  { %1322 = vmatprep.subr.bf16.mxu0 %v1321_v15  ;;  %v1976_v34 = vpack.c.bf16 %v316_v33, %v314_v32  ;;  %v318_v37 = vld [vmem:[#allocation7 + $0x28] sm:$0xff]  ;;  %v1978_v38 = vpack.c.bf16 %v315_v36, %v313_v35  ;;  %v320_v39 = vld [vmem:[#allocation7 + $0x38] sm:$0xff]  ;;  %v317_v40 = vld [vmem:[#allocation7 + $0x20] sm:$0xff] }
  0x55   :  { %v319_v41 = vld [vmem:[#allocation7 + $0x30] sm:$0xff]  ;;  %v1981_v43 = vpack.c.bf16 %v320_v39, %v318_v37  ;;  %v322_v44 = vld [vmem:[#allocation7 + $0x48] sm:$0xff]  ;;  %v324_v45 = vld [vmem:[#allocation7 + $0x58] sm:$0xff] }
  0x56   :  { %1346 = vmatprep.subr.bf16.mxu1 %v1976_v34  ;;  %v113_v47 = vld [vmem:[#allocation5 + $0xa0] sm:$0xff]  ;;  %v115_v48 = vld [vmem:[#allocation5 + $0xb0] sm:$0xff]  ;;  %v118_v49 = vld [vmem:[#allocation5 + $0xc8] sm:$0xff]  ;;  %v1984_v50 = vpack.c.bf16 %v319_v41, %v317_v40  ;;  %v1987_v52 = vpack.c.bf16 %v324_v45, %v322_v44 }
  0x57   :  { %1324 = vmatpush1.bf16.msra.mxu0 %v1323_v20  ;;  %1348 = vmatpush1.bf16.msra.mxu1 %v1978_v38  ;;  %v120_v51 = vld [vmem:[#allocation5 + $0xd8] sm:$0xff]  ;;  %v321_v53 = vld [vmem:[#allocation7 + $0x40] sm:$0xff]  ;;  %v323_v54 = vld [vmem:[#allocation7 + $0x50] sm:$0xff]  ;;  %v1335_v57 = vpack.c.bf16 %v115_v48, %v113_v47 }
  0x58   :  { %1326 = vmatprep.subr.bf16.mxu0 %v1325_v21  ;;  %1350 = vmatprep.subr.bf16.mxu1 %v1981_v43  ;;  %v326_v55 = vld [vmem:[#allocation7 + $0x68] sm:$0xff]  ;;  %v328_v56 = vld [vmem:[#allocation7 + $0x78] sm:$0xff]  ;;  %v1337_v58 = vpack.c.bf16 %v120_v51, %v118_v49  ;;  %v117_v59 = vld [vmem:[#allocation5 + $0xc0] sm:$0xff]  ;;  %v1990_v62 = vpack.c.bf16 %v323_v54, %v321_v53 }
  0x59   :  { %v119_v60 = vld [vmem:[#allocation5 + $0xd0] sm:$0xff]  ;;  %v122_v61 = vld [vmem:[#allocation5 + $0xe8] sm:$0xff]  ;;  %v124_v63 = vld [vmem:[#allocation5 + $0xf8] sm:$0xff]  ;;  %v1993_v1 = vpack.c.bf16 %v328_v56, %v326_v55 }
  0x5a   :  { %v325_v2 = vld [vmem:[#allocation7 + $0x60] sm:$0xff]  ;;  %v327_v3 = vld [vmem:[#allocation7 + $0x70] sm:$0xff]  ;;  %v330_v4 = vld [vmem:[#allocation7 + $0x88] sm:$0xff]  ;;  %v1339_v6 = vpack.c.bf16 %v119_v60, %v117_v59  ;;  %v1341_v7 = vpack.c.bf16 %v124_v63, %v122_v61 }
  0x5b   :  { %1328 = vmatpush1.bf16.msra.mxu0 %v1327_v26  ;;  %1352 = vmatpush1.bf16.msra.mxu1 %v1984_v50  ;;  %v332_v5 = vld [vmem:[#allocation7 + $0x98] sm:$0xff]  ;;  %v121_v8 = vld [vmem:[#allocation5 + $0xe0] sm:$0xff]  ;;  %v123_v9 = vld [vmem:[#allocation5 + $0xf0] sm:$0xff]  ;;  %v1996_v10 = vpack.c.bf16 %v327_v3, %v325_v2 }
  0x5c   :  { %1330 = vmatprep.subr.bf16.mxu0 %v1329_v30  ;;  %1354 = vmatprep.subr.bf16.mxu1 %v1987_v52  ;;  %v1999_v11 = vpack.c.bf16 %v332_v5, %v330_v4  ;;  %v329_v12 = vld [vmem:[#allocation7 + $0x80] sm:$0xff]  ;;  %v331_v13 = vld [vmem:[#allocation7 + $0x90] sm:$0xff]  ;;  %v334_v14 = vld [vmem:[#allocation7 + $0xa8] sm:$0xff]  ;;  %v1343_v16 = vpack.c.bf16 %v123_v9, %v121_v8 }
  0x5d   :  { %v336_v15 = vld [vmem:[#allocation7 + $0xb8] sm:$0xff]  ;;  %v2002_v17 = vpack.c.bf16 %v331_v13, %v329_v12  ;;  %v333_v19 = vld [vmem:[#allocation7 + $0xa0] sm:$0xff]  ;;  %v335_v20 = vld [vmem:[#allocation7 + $0xb0] sm:$0xff] }
  0x5e   :  { %v2005_v18 = vpack.c.bf16 %v336_v15, %v334_v14  ;;  %v338_v21 = vld [vmem:[#allocation7 + $0xc8] sm:$0xff]  ;;  %v340_v22 = vld [vmem:[#allocation7 + $0xd8] sm:$0xff]  ;;  %v82_v23 = vld [vmem:[#allocation2] sm:$0xff]  ;;  %v2008_v24 = vpack.c.bf16 %v335_v20, %v333_v19 }
  0x5f   :  { %1332 = vmatpush1.bf16.msra.mxu0 %v1331_v42  ;;  %1356 = vmatpush1.bf16.msra.mxu1 %v1990_v62  ;;  %v2012_v25 = vpack.c.bf16 %v340_v22, %v338_v21  ;;  %v337_v26 = vld [vmem:[#allocation7 + $0xc0] sm:$0xff]  ;;  %v339_v27 = vld [vmem:[#allocation7 + $0xd0] sm:$0xff]  ;;  %v342_v28 = vld [vmem:[#allocation7 + $0xe8] sm:$0xff] }
  0x60   :  { %1334 = vmatprep.subr.bf16.mxu0 %v1333_v46  ;;  %1358 = vmatprep.subr.bf16.mxu1 %v1993_v1  ;;  %v344_v29 = vld [vmem:[#allocation7 + $0xf8] sm:$0xff]  ;;  %v83_v30 = vld [vmem:[#allocation2 + $0x8] sm:$0xff]  ;;  %v2017_v31 = vpack.c.bf16 %v339_v27, %v337_v26  ;;  %v341_v33 = vld [vmem:[#allocation7 + $0xe0] sm:$0xff] }
  0x61   :  { %v2021_v32 = vpack.c.bf16 %v344_v29, %v342_v28  ;;  %v343_v35 = vld [vmem:[#allocation7 + $0xf0] sm:$0xff]  ;;  %v346_v36 = vld [vmem:[#allocation7 + $0x108] sm:$0xff]  ;;  %v348_v37 = vld [vmem:[#allocation7 + $0x118] sm:$0xff] }
  0x62   :  { %v84_v39 = vld [vmem:[#allocation2 + $0x10] sm:$0xff]  ;;  %v2026_v40 = vpack.c.bf16 %v343_v35, %v341_v33  ;;  %v2030_v41 = vpack.c.bf16 %v348_v37, %v346_v36  ;;  %v345_v42 = vld [vmem:[#allocation7 + $0x100] sm:$0xff]  ;;  %v350_v45 = vld [vmem:[#allocation7 + $0x128] sm:$0xff] }
  0x63   :  { %1336 = vmatpush1.bf16.msra.mxu0 %v1335_v57  ;;  %1360 = vmatpush1.bf16.msra.mxu1 %v1996_v10  ;;  %v347_v44 = vld [vmem:[#allocation7 + $0x110] sm:$0xff]  ;;  %v352_v46 = vld [vmem:[#allocation7 + $0x138] sm:$0xff]  ;;  %v349_v51 = vld [vmem:[#allocation7 + $0x120] sm:$0xff] }
  0x64   :  { %1338 = vmatprep.subr.bf16.mxu0 %v1337_v58  ;;  %1362 = vmatprep.subr.bf16.mxu1 %v1999_v11  ;;  %v85_v47 = vld [vmem:[#allocation2 + $0x18] sm:$0xff]  ;;  %v2035_v48 = vpack.c.bf16 %v347_v44, %v345_v42  ;;  %v2039_v49 = vpack.c.bf16 %v352_v46, %v350_v45  ;;  %v351_v53 = vld [vmem:[#allocation7 + $0x130] sm:$0xff]  ;;  %v354_v54 = vld [vmem:[#allocation7 + $0x148] sm:$0xff]  ;;  %v126_v46 = vlaneseq }
  0x65   :  { %v356_v55 = vld [vmem:[#allocation7 + $0x158] sm:$0xff]  ;;  %v86_v56 = vld [vmem:[#allocation2 + $0x20] sm:$0xff]  ;;  %v2044_v57 = vpack.c.bf16 %v351_v53, %v349_v51  ;;  %v355_v60 = vld [vmem:[#allocation7 + $0x150] sm:$0xff] }
  0x66   :  { %v2048_v58 = vpack.c.bf16 %v356_v55, %v354_v54  ;;  %v353_v59 = vld [vmem:[#allocation7 + $0x140] sm:$0xff]  ;;  %v87_v61 = vld [vmem:[#allocation2 + $0x28] sm:$0xff]  ;;  %v88_v2 = vld [vmem:[#allocation2 + $0x30] sm:$0xff] }
  0x67   :  { %1340 = vmatpush1.bf16.msra.mxu0 %v1339_v6  ;;  %1364 = vmatpush1.bf16.msra.mxu1 %v2002_v17  ;;  %v2053_v63 = vpack.c.bf16 %v355_v60, %v353_v59  ;;  %v89_v3 = vld [vmem:[#allocation2 + $0x38] sm:$0xff]  ;;  %v357_v6 = vld [vmem:[#allocation7 + $0x160] sm:$0xff]  ;;  %v362_v9 = vld [vmem:[#allocation7 + $0x188] sm:$0xff] }
  0x68   :  { %1342 = vmatprep.subr.bf16.mxu0 %v1341_v7  ;;  %1366 = vmatprep.subr.bf16.mxu1 %v2005_v18  ;;  %v360_v4 = vld [vmem:[#allocation7 + $0x178] sm:$0xff]  ;;  %v359_v7 = vld [vmem:[#allocation7 + $0x170] sm:$0xff]  ;;  %v361_v14 = vld [vmem:[#allocation7 + $0x180] sm:$0xff] }
  0x69   :  { %v2073_v8 = vpack.c.bf16 %v359_v7, %v357_v6  ;;  %v364_v12 = vld [vmem:[#allocation7 + $0x198] sm:$0xff]  ;;  %v363_v15 = vld [vmem:[#allocation7 + $0x190] sm:$0xff]  ;;  %v366_v19 = vld [vmem:[#allocation7 + $0x1a8] sm:$0xff] }
  0x6a   :  { %v2079_v13 = vpack.c.bf16 %v364_v12, %v362_v9  ;;  %v368_v20 = vld [vmem:[#allocation7 + $0x1b8] sm:$0xff]  ;;  %v365_v22 = vld [vmem:[#allocation7 + $0x1a0] sm:$0xff]  ;;  %v370_v27 = vld [vmem:[#allocation7 + $0x1c8] sm:$0xff] }
  0x6b   :  { %1344 = vmatpush1.bf16.msra.mxu0 %v1343_v16  ;;  %1368 = vmatpush1.bf16.msra.mxu1 %v2008_v24  ;;  %v2081_v16 = vpack.c.bf16 %v363_v15, %v361_v14  ;;  %v2087_v21 = vpack.c.bf16 %v368_v20, %v366_v19  ;;  %v372_v28 = vld [vmem:[#allocation7 + $0x1d8] sm:$0xff]  ;;  %v371_v33 = vld [vmem:[#allocation7 + $0x1d0] sm:$0xff]  ;;  %v374_v36 = vld [vmem:[#allocation7 + $0x1e8] sm:$0xff] }
  0x6c   :  { %1410 = vmatprep.subr.bf16.mxu0 %v1976_v34  ;;  %1370 = vmatprep.subr.bf16.mxu1 %v2012_v25  ;;  %v2095_v29 = vpack.c.bf16 %v372_v28, %v370_v27  ;;  %v376_v37 = vld [vmem:[#allocation7 + $0x1f8] sm:$0xff]  ;;  %v373_v42 = vld [vmem:[#allocation7 + $0x1e0] sm:$0xff]  ;;  %v375_v44 = vld [vmem:[#allocation7 + $0x1f0] sm:$0xff] }
  0x6d   :  { %v2105_v45 = vpack.c.bf16 %v375_v44, %v373_v42  ;;  %v90_v53 = vld [vmem:[%s2297_s2] sm:$0x3] }
  0x6e   :  { %201 = vmatmul.mubr.f32.vlgmr.msra.gmra.mrb[0].mxu0 %v82_v23  ;;  %v367_v23 = vld [vmem:[#allocation7 + $0x1b0] sm:$0xff] }
  0x6f   :  { %206 = vmatprep.mubr.f32.mxu0 %v1869_v0  ;;  %1412 = vmatpush1.bf16.msra.mxu0 %v1978_v38  ;;  %v2089_v26 = vpack.c.bf16 %v367_v23, %v365_v22 }
  0x70   :  { %1414 = vmatprep.subr.bf16.mxu0 %v1981_v43  ;;  %1372 = vmatpush1.bf16.msra.mxu1 %v2017_v31 }
  0x71   :  { %1374 = vmatprep.subr.bf16.mxu1 %v2021_v32 }
  0x72   :  { %207 = vmatmul.mubr.f32.gmra.mrb[2].mxu0 %v83_v30  ;;  %v369_v30 = vld [vmem:[#allocation7 + $0x1c0] sm:$0xff] }
  0x73   :  { %212 = vmatprep.mubr.f32.mxu0 %v1869_v0  ;;  %1416 = vmatpush1.bf16.msra.mxu0 %v1984_v50  ;;  %v2097_v35 = vpack.c.bf16 %v371_v33, %v369_v30 }
  0x74   :  { %1418 = vmatprep.subr.bf16.mxu0 %v1987_v52  ;;  %1376 = vmatpush1.bf16.msra.mxu1 %v2026_v40 }
  0x75   :  { %1378 = vmatprep.subr.bf16.mxu1 %v2030_v41 }
  0x76   :  { %213 = vmatmul.mubr.f32.gmra.mrb[4].mxu0 %v84_v39  ;;  %v2103_v39 = vpack.c.bf16 %v376_v37, %v374_v36 }
  0x77   :  { %218 = vmatprep.mubr.f32.mxu0 %v1869_v0  ;;  %1420 = vmatpush1.bf16.msra.mxu0 %v1990_v62 }
  0x78   :  { %1422 = vmatprep.subr.bf16.mxu0 %v1993_v1  ;;  %1380 = vmatpush1.bf16.msra.mxu1 %v2035_v48 }
  0x79   :  { %1382 = vmatprep.subr.bf16.mxu1 %v2039_v49 }
  0x7a   :  { %219 = vmatmul.mubr.f32.gmra.mrb[6].mxu0 %v85_v47  ;;  %v2112_v47 = vshrl.u32 %v126_v46, 7 }
  0x7b   :  { %224 = vmatprep.mubr.f32.mxu0 %v1869_v0  ;;  %1424 = vmatpush1.bf16.msra.mxu0 %v1996_v10 }
  0x7c   :  { %1426 = vmatprep.subr.bf16.mxu0 %v1999_v11  ;;  %1384 = vmatpush1.bf16.msra.mxu1 %v2044_v57  ;;  %v2115_v51 = vsub.s32 0, %v2112_v47  ;;  %v2121_v54 = vsub.s32 1, %v2112_v47 }
  0x7d   :  { %1386 = vmatprep.subr.bf16.mxu1 %v2048_v58 }
  0x7e   :  { %225 = vmatmul.mubr.f32.gmra.mrb[8].mxu0 %v86_v56  ;;  %v2124_v55 = vrot.slane %v90_v53, %v2115_v51  ;;  %v2127_v56 = vrot.slane %v90_v53, %v2121_v54 }
  0x7f   :  { %230 = vmatprep.mubr.f32.mxu0 %v1869_v0  ;;  %1428 = vmatpush1.bf16.msra.mxu0 %v2002_v17 }
  0x80   :  { %1430 = vmatprep.subr.bf16.mxu0 %v2005_v18  ;;  %1388 = vmatpush1.bf16.msra.mxu1 %v2053_v63 }
  0x82   :  { %231 = vmatmul.mubr.f32.gmra.mrb[10].mxu0 %v87_v61 }
  0x83   :  { %236 = vmatprep.mubr.f32.mxu0 %v1869_v0  ;;  %1432 = vmatpush1.bf16.msra.mxu0 %v2008_v24 }
  0x84   :  { %1434 = vmatprep.subr.bf16.mxu0 %v2012_v25 }
  0x86   :  { %237 = vmatmul.mubr.f32.gmra.mrb[12].mxu0 %v88_v2 }
  0x87   :  { %242 = vmatprep.mubr.f32.mxu0 %v1869_v0  ;;  %1436 = vmatpush1.bf16.msra.mxu0 %v2017_v31  ;;  %v358_v0 = vld [vmem:[#allocation7 + $0x168] sm:$0xff] }
  0x88   :  { %1438 = vmatprep.subr.bf16.mxu0 %v2021_v32  ;;  %v2071_v5 = vpack.c.bf16 %v360_v4, %v358_v0 }
  0x8a   :  { %243 = vmatmul.mubr.f32.gmra.mrb[14].mxu0 %v89_v3  ;;  %1390 = vmatprep.subr.bf16.mxu1 %v2071_v5 }
  0x8b   :  { %1440 = vmatpush1.bf16.msra.mxu0 %v2026_v40  ;;  %1392 = vmatpush1.bf16.msra.mxu1 %v2073_v8 }
  0x8c   :  { %1442 = vmatprep.subr.bf16.mxu0 %v2030_v41  ;;  %1394 = vmatprep.subr.bf16.mxu1 %v2079_v13 }
  0x8f   :  { %1444 = vmatpush1.bf16.msra.mxu0 %v2035_v48  ;;  %1396 = vmatpush1.bf16.msra.mxu1 %v2081_v16 }
  0x90   :  { %1446 = vmatprep.subr.bf16.mxu0 %v2039_v49  ;;  %1398 = vmatprep.subr.bf16.mxu1 %v2087_v21 }
  0x93   :  { %1448 = vmatpush1.bf16.msra.mxu0 %v2044_v57  ;;  %1400 = vmatpush1.bf16.msra.mxu1 %v2089_v26 }
  0x94   :  { %1450 = vmatprep.subr.bf16.mxu0 %v2048_v58  ;;  %1402 = vmatprep.subr.bf16.mxu1 %v2095_v29 }
  0x97   :  { %1452 = vmatpush1.bf16.msra.mxu0 %v2053_v63  ;;  %1404 = vmatpush1.bf16.msra.mxu1 %v2097_v35 }
  0x98   :  { %1454 = vmatprep.subr.bf16.mxu0 %v2071_v5  ;;  %1406 = vmatprep.subr.bf16.mxu1 %v2103_v39 }
  0x9b   :  { %1456 = vmatpush1.bf16.msra.mxu0 %v2073_v8  ;;  %1408 = vmatpush1.bf16.msra.mxu1 %v2105_v45 }
  0x9c   :  { %1458 = vmatprep.subr.bf16.mxu0 %v2079_v13  ;;  %1474 = vmatprep.subr.bf16.mxu1 %v1976_v34 }
  0x9f   :  { %1460 = vmatpush1.bf16.msra.mxu0 %v2081_v16 }
  0xa0   :  { %1462 = vmatprep.subr.bf16.mxu0 %v2087_v21 }
  0xa3   :  { %1464 = vmatpush1.bf16.msra.mxu0 %v2089_v26 }
  0xa4   :  { %1466 = vmatprep.subr.bf16.mxu0 %v2095_v29 }
  0xa7   :  { %1468 = vmatpush1.bf16.msra.mxu0 %v2097_v35 }
  0xa8   :  { %1470 = vmatprep.subr.bf16.mxu0 %v2103_v39 }
  0xab   :  { %1472 = vmatpush1.bf16.msra.mxu0 %v2105_v45 }
 0x141   :  { %v202_v34 = vpop.f32.mrb[0].mxu0 }
 0x142   :  { %v203_v59 = vadd.f32 %v202_v34, %v2124_v55  ;;  %v204_v60 = vpop.f32.mrb[1].mxu0 }
 0x143   :  { %v205_v61 = vadd.f32 %v204_v60, %v2127_v56 }
 0x144   :  { %v249_v2 = vmul.f32 0.5, %v203_v59 }
 0x145   :  { %v250_v3 = vmul.f32 0.5, %v205_v61  ;;  %v208_v0 = vpop.f32.mrb[2].mxu0 }
 0x146   :  { %1677 = vtanh.f32 %v249_v2  ;;  %v209_v4 = vadd.f32 %v208_v0, %v2124_v55  ;;  %v210_v6 = vpop.f32.mrb[3].mxu0 }
 0x147   :  { %1679 = vtanh.f32 %v250_v3  ;;  %v211_v7 = vadd.f32 %v210_v6, %v2127_v56 }
 0x148   :  { %v251_v9 = vmul.f32 0.5, %v209_v4 }
 0x149   :  { %v252_v12 = vmul.f32 0.5, %v211_v7  ;;  %v214_v14 = vpop.f32.mrb[4].mxu0 }
 0x14a   :  { %1681 = vtanh.f32 %v251_v9  ;;  %v215_v15 = vadd.f32 %v214_v14, %v2124_v55  ;;  %v216_v19 = vpop.f32.mrb[5].mxu0 }
 0x14b   :  { %1683 = vtanh.f32 %v252_v12  ;;  %v217_v20 = vadd.f32 %v216_v19, %v2127_v56 }
 0x14c   :  { %v253_v22 = vmul.f32 0.5, %v215_v15 }
 0x14d   :  { %v254_v23 = vmul.f32 0.5, %v217_v20  ;;  %v220_v27 = vpop.f32.mrb[6].mxu0 }
 0x14e   :  { %1685 = vtanh.f32 %v253_v22  ;;  %v221_v28 = vadd.f32 %v220_v27, %v2124_v55  ;;  %v222_v30 = vpop.f32.mrb[7].mxu0 }
 0x14f   :  { %1687 = vtanh.f32 %v254_v23  ;;  %v223_v33 = vadd.f32 %v222_v30, %v2127_v56 }
 0x150   :  { %v1678_v36 = vpop.eup %1677  ;;  %v255_v37 = vmul.f32 0.5, %v221_v28 }
 0x151   :  { %v1680_v42 = vpop.eup %1679  ;;  %v281_v44 = vmul.f32 0.5, %v1678_v36  ;;  %v256_v46 = vmul.f32 0.5, %v223_v33  ;;  %v226_v53 = vpop.f32.mrb[8].mxu0 }
 0x152   :  { %1689 = vtanh.f32 %v255_v37  ;;  %v227_v34 = vadd.f32 %v226_v53, %v2124_v55  ;;  %v228_v59 = vpop.f32.mrb[9].mxu0  ;;  %v282_v60 = vmul.f32 0.5, %v1680_v42 }
 0x153   :  { %1691 = vtanh.f32 %v256_v46  ;;  %v229_v61 = vadd.f32 %v228_v59, %v2127_v56  ;;  %v297_v12 = vadd.f32 0.5, %v281_v44 }
 0x154   :  { %v1682_v2 = vpop.eup %1681  ;;  %v257_v3 = vmul.f32 0.5, %v227_v34  ;;  %v298_v0 = vadd.f32 0.5, %v282_v60 }
 0x155   :  { %v1684_v4 = vpop.eup %1683  ;;  %v283_v6 = vmul.f32 0.5, %v1682_v2  ;;  %v258_v7 = vmul.f32 0.5, %v229_v61  ;;  %v232_v9 = vpop.f32.mrb[10].mxu0 }
 0x156   :  { %v284_v14 = vmul.f32 0.5, %v1684_v4  ;;  %1693 = vtanh.f32 %v257_v3  ;;  %v233_v15 = vadd.f32 %v232_v9, %v2124_v55  ;;  %v234_v19 = vpop.f32.mrb[11].mxu0  ;;  %452 = vmatprep.mubr.f32.mxu1 %v298_v0 }
 0x157   :  { %1695 = vtanh.f32 %v258_v7  ;;  %v235_v20 = vadd.f32 %v234_v19, %v2127_v56  ;;  %453 = vmatmul.mubr.f32.vlgmr.msra.gmra.mrb[0].mxu1 %v297_v12  ;;  %v299_v37 = vadd.f32 0.5, %v283_v6 }
 0x158   :  { %v1686_v22 = vpop.eup %1685  ;;  %v259_v23 = vmul.f32 0.5, %v233_v15  ;;  %v300_v27 = vadd.f32 0.5, %v284_v14  ;;  %1476 = vmatpush1.bf16.msra.mxu1 %v1978_v38 }
 0x159   :  { %v1688_v28 = vpop.eup %1687  ;;  %v285_v30 = vmul.f32 0.5, %v1686_v22  ;;  %v260_v33 = vmul.f32 0.5, %v235_v20  ;;  %v238_v36 = vpop.f32.mrb[12].mxu0  ;;  %1478 = vmatprep.subr.bf16.mxu1 %v1981_v43 }
 0x15a   :  { %v286_v42 = vmul.f32 0.5, %v1688_v28  ;;  %1697 = vtanh.f32 %v259_v23  ;;  %v239_v44 = vadd.f32 %v238_v36, %v2124_v55  ;;  %v240_v46 = vpop.f32.mrb[13].mxu0  ;;  %458 = vmatprep.mubr.f32.mxu1 %v300_v27 }
 0x15b   :  { %1699 = vtanh.f32 %v260_v33  ;;  %v241_v53 = vadd.f32 %v240_v46, %v2127_v56  ;;  %459 = vmatmul.mubr.f32.gmra.mrb[2].mxu1 %v299_v37  ;;  %v301_v43 = vadd.f32 0.5, %v285_v30 }
 0x15c   :  { %v1690_v34 = vpop.eup %1689  ;;  %v261_v59 = vmul.f32 0.5, %v239_v44  ;;  %v302_v38 = vadd.f32 0.5, %v286_v42  ;;  %1480 = vmatpush1.bf16.msra.mxu1 %v1984_v50 }
 0x15d   :  { %v1692_v60 = vpop.eup %1691  ;;  %v287_v61 = vmul.f32 0.5, %v1690_v34  ;;  %v262_v2 = vmul.f32 0.5, %v241_v53  ;;  %v244_v3 = vpop.f32.mrb[14].mxu0  ;;  %1482 = vmatprep.subr.bf16.mxu1 %v1987_v52 }
 0x15e   :  { %v288_v0 = vmul.f32 0.5, %v1692_v60  ;;  %1701 = vtanh.f32 %v261_v59  ;;  %v245_v4 = vadd.f32 %v244_v3, %v2124_v55  ;;  %v246_v6 = vpop.f32.mrb[15].mxu0  ;;  %464 = vmatprep.mubr.f32.mxu1 %v302_v38 }
 0x15f   :  { %1703 = vtanh.f32 %v262_v2  ;;  %v247_v7 = vadd.f32 %v246_v6, %v2127_v56  ;;  %465 = vmatmul.mubr.f32.gmra.mrb[4].mxu1 %v301_v43  ;;  %v303_v20 = vadd.f32 0.5, %v287_v61 }
 0x160   :  { %v1694_v9 = vpop.eup %1693  ;;  %v263_v12 = vmul.f32 0.5, %v245_v4  ;;  %v304_v50 = vadd.f32 0.5, %v288_v0  ;;  %1484 = vmatpush1.bf16.msra.mxu1 %v1990_v62 }
 0x161   :  { %v1696_v14 = vpop.eup %1695  ;;  %v289_v15 = vmul.f32 0.5, %v1694_v9  ;;  %v264_v19 = vmul.f32 0.5, %v247_v7  ;;  %1486 = vmatprep.subr.bf16.mxu1 %v1993_v1 }
 0x162   :  { %v290_v52 = vmul.f32 0.5, %v1696_v14  ;;  %1705 = vtanh.f32 %v263_v12  ;;  %470 = vmatprep.mubr.f32.mxu1 %v304_v50 }
 0x163   :  { %1707 = vtanh.f32 %v264_v19  ;;  %471 = vmatmul.mubr.f32.gmra.mrb[6].mxu1 %v303_v20  ;;  %v305_v27 = vadd.f32 0.5, %v289_v15 }
 0x164   :  { %v1698_v55 = vpop.eup %1697  ;;  %v306_v22 = vadd.f32 0.5, %v290_v52  ;;  %1488 = vmatpush1.bf16.msra.mxu1 %v1996_v10 }
 0x165   :  { %v1700_v56 = vpop.eup %1699  ;;  %v291_v23 = vmul.f32 0.5, %v1698_v55  ;;  %1490 = vmatprep.subr.bf16.mxu1 %v1999_v11 }
 0x166   :  { %v292_v62 = vmul.f32 0.5, %v1700_v56  ;;  %476 = vmatprep.mubr.f32.mxu1 %v306_v22 }
 0x167   :  { %477 = vmatmul.mubr.f32.gmra.mrb[8].mxu1 %v305_v27  ;;  %v307_v36 = vadd.f32 0.5, %v291_v23 }
 0x168   :  { %v1702_v28 = vpop.eup %1701  ;;  %v308_v30 = vadd.f32 0.5, %v292_v62  ;;  %1492 = vmatpush1.bf16.msra.mxu1 %v2002_v17 }
 0x169   :  { %v1704_v1 = vpop.eup %1703  ;;  %v293_v33 = vmul.f32 0.5, %v1702_v28  ;;  %1494 = vmatprep.subr.bf16.mxu1 %v2005_v18  ;;  %v91_v18 = vld [vmem:[%s2299_s4] sm:$0x3] }
 0x16a   :  { %v294_v37 = vmul.f32 0.5, %v1704_v1  ;;  %482 = vmatprep.mubr.f32.mxu1 %v308_v30 }
 0x16b   :  { %483 = vmatmul.mubr.f32.gmra.mrb[10].mxu1 %v307_v36  ;;  %v309_v46 = vadd.f32 0.5, %v293_v33 }
 0x16c   :  { %v1706_v10 = vpop.eup %1705  ;;  %v310_v42 = vadd.f32 0.5, %v294_v37  ;;  %1496 = vmatpush1.bf16.msra.mxu1 %v2008_v24  ;;  %v2180_v24 = vrot.slane %v91_v18, %v2115_v51 }
 0x16d   :  { %v1708_v11 = vpop.eup %1707  ;;  %v295_v44 = vmul.f32 0.5, %v1706_v10  ;;  %1498 = vmatprep.subr.bf16.mxu1 %v2012_v25  ;;  %v2183_v25 = vrot.slane %v91_v18, %v2121_v54 }
 0x16e   :  { %v296_v53 = vmul.f32 0.5, %v1708_v11  ;;  %488 = vmatprep.mubr.f32.mxu1 %v310_v42 }
 0x16f   :  { %489 = vmatmul.mubr.f32.gmra.mrb[12].mxu1 %v309_v46  ;;  %v311_v34 = vadd.f32 0.5, %v295_v44 }
 0x170   :  { %v312_v17 = vadd.f32 0.5, %v296_v53  ;;  %1500 = vmatpush1.bf16.msra.mxu1 %v2017_v31 }
 0x171   :  { %1502 = vmatprep.subr.bf16.mxu1 %v2021_v32 }
 0x172   :  { %494 = vmatprep.mubr.f32.mxu1 %v312_v17 }
 0x173   :  { %495 = vmatmul.mubr.f32.gmra.mrb[14].mxu1 %v311_v34 }
 0x174   :  { %1504 = vmatpush1.bf16.msra.mxu1 %v2026_v40 }
 0x175   :  { %1506 = vmatprep.subr.bf16.mxu1 %v2030_v41 }
 0x178   :  { %1508 = vmatpush1.bf16.msra.mxu1 %v2035_v48 }
 0x179   :  { %1510 = vmatprep.subr.bf16.mxu1 %v2039_v49 }
 0x17c   :  { %1512 = vmatpush1.bf16.msra.mxu1 %v2044_v57 }
 0x17d   :  { %1514 = vmatprep.subr.bf16.mxu1 %v2048_v58 }
 0x180   :  { %1516 = vmatpush1.bf16.msra.mxu1 %v2053_v63 }
 0x181   :  { %1518 = vmatprep.subr.bf16.mxu1 %v2071_v5 }
 0x184   :  { %1520 = vmatpush1.bf16.msra.mxu1 %v2073_v8 }
 0x185   :  { %1522 = vmatprep.subr.bf16.mxu1 %v2079_v13 }
 0x188   :  { %1524 = vmatpush1.bf16.msra.mxu1 %v2081_v16 }
 0x189   :  { %1526 = vmatprep.subr.bf16.mxu1 %v2087_v21 }
 0x18c   :  { %1528 = vmatpush1.bf16.msra.mxu1 %v2089_v26 }
 0x18d   :  { %1530 = vmatprep.subr.bf16.mxu1 %v2095_v29 }
 0x190   :  { %1532 = vmatpush1.bf16.msra.mxu1 %v2097_v35 }
 0x191   :  { %1534 = vmatprep.subr.bf16.mxu1 %v2103_v39 }
 0x194   :  { %1536 = vmatpush1.bf16.msra.mxu1 %v2105_v45 }
 0x22a   :  { %v454_v31 = vpop.f32.mrb[0].mxu1 }
 0x22b   :  { %v455_v32 = vadd.f32 %v454_v31, %v2180_v24  ;;  %v456_v40 = vpop.f32.mrb[1].mxu1 }
 0x22c   :  { %v457_v41 = vadd.f32 %v456_v40, %v2183_v25 }
 0x22d   :  { %v501_v48 = vmul.f32 0.5, %v455_v32 }
 0x22e   :  { %v502_v49 = vmul.f32 0.5, %v457_v41  ;;  %v460_v57 = vpop.f32.mrb[2].mxu1 }
 0x22f   :  { %1709 = vtanh.f32 %v501_v48  ;;  %v461_v58 = vadd.f32 %v460_v57, %v2180_v24  ;;  %v462_v63 = vpop.f32.mrb[3].mxu1 }
 0x230   :  { %1711 = vtanh.f32 %v502_v49  ;;  %v463_v5 = vadd.f32 %v462_v63, %v2183_v25 }
 0x231   :  { %v503_v8 = vmul.f32 0.5, %v461_v58 }
 0x232   :  { %v504_v13 = vmul.f32 0.5, %v463_v5  ;;  %v466_v16 = vpop.f32.mrb[4].mxu1 }
 0x233   :  { %1713 = vtanh.f32 %v503_v8  ;;  %v467_v21 = vadd.f32 %v466_v16, %v2180_v24  ;;  %v468_v26 = vpop.f32.mrb[5].mxu1 }
 0x234   :  { %1715 = vtanh.f32 %v504_v13  ;;  %v469_v29 = vadd.f32 %v468_v26, %v2183_v25 }
 0x235   :  { %v505_v35 = vmul.f32 0.5, %v467_v21 }
 0x236   :  { %v506_v39 = vmul.f32 0.5, %v469_v29  ;;  %v472_v45 = vpop.f32.mrb[6].mxu1 }
 0x237   :  { %1717 = vtanh.f32 %v505_v35  ;;  %v473_v59 = vadd.f32 %v472_v45, %v2180_v24  ;;  %v474_v38 = vpop.f32.mrb[7].mxu1 }
 0x238   :  { %1719 = vtanh.f32 %v506_v39  ;;  %v475_v60 = vadd.f32 %v474_v38, %v2183_v25 }
 0x239   :  { %v1710_v61 = vpop.eup %1709  ;;  %v507_v2 = vmul.f32 0.5, %v473_v59 }
 0x23a   :  { %v1712_v3 = vpop.eup %1711  ;;  %v533_v43 = vmul.f32 0.5, %v1710_v61  ;;  %v508_v0 = vmul.f32 0.5, %v475_v60  ;;  %v478_v4 = vpop.f32.mrb[8].mxu1 }
 0x23b   :  { %v534_v6 = vmul.f32 0.5, %v1712_v3  ;;  %1721 = vtanh.f32 %v507_v2  ;;  %v479_v7 = vadd.f32 %v478_v4, %v2180_v24  ;;  %v480_v9 = vpop.f32.mrb[9].mxu1 }
 0x23c   :  { %1723 = vtanh.f32 %v508_v0  ;;  %v481_v12 = vadd.f32 %v480_v9, %v2183_v25  ;;  %v549_v20 = vadd.f32 0.5, %v533_v43 }
 0x23d   :  { %v1714_v50 = vpop.eup %1713  ;;  %v509_v14 = vmul.f32 0.5, %v479_v7  ;;  %v550_v15 = vadd.f32 0.5, %v534_v6 }
 0x23e   :  { %v1716_v19 = vpop.eup %1715  ;;  %v535_v52 = vmul.f32 0.5, %v1714_v50  ;;  %v510_v55 = vmul.f32 0.5, %v481_v12  ;;  %v484_v22 = vpop.f32.mrb[10].mxu1 }
 0x23f   :  { %v536_v56 = vmul.f32 0.5, %v1716_v19  ;;  %1725 = vtanh.f32 %v509_v14  ;;  %v485_v23 = vadd.f32 %v484_v22, %v2180_v24  ;;  %v486_v27 = vpop.f32.mrb[11].mxu1  ;;  %629 = vmatprep.mubr.f32.mxu0 %v550_v15  ;;  %v890_v22 = vld [vmem:[#allocation8 + $0x18] sm:$0xff] }
 0x240   :  { %1727 = vtanh.f32 %v510_v55  ;;  %v487_v62 = vadd.f32 %v486_v27, %v2183_v25  ;;  %630 = vmatmul.mubr.f32.vlgmr.msra.gmra.mrb[16].mxu0 %v549_v20  ;;  %v551_v42 = vadd.f32 0.5, %v535_v52  ;;  %v888_v52 = vld [vmem:[#allocation8 + $0x8] sm:$0xff]  ;;  %v887_v27 = vld [vmem:[#allocation8] sm:$0xff] }
 0x241   :  { %v1718_v28 = vpop.eup %1717  ;;  %v511_v30 = vmul.f32 0.5, %v485_v23  ;;  %v552_v1 = vadd.f32 0.5, %v536_v56  ;;  %v892_v55 = vld [vmem:[#allocation8 + $0x28] sm:$0xff]  ;;  %v894_v23 = vld [vmem:[#allocation8 + $0x38] sm:$0xff] }
 0x242   :  { %v1720_v33 = vpop.eup %1719  ;;  %v537_v36 = vmul.f32 0.5, %v1718_v28  ;;  %v512_v37 = vmul.f32 0.5, %v487_v62  ;;  %v490_v10 = vpop.f32.mrb[12].mxu1  ;;  %v1537_v56 = vpack.c.bf16 %v892_v55, %v888_v52  ;;  %v891_v62 = vld [vmem:[#allocation8 + $0x20] sm:$0xff]  ;;  %v1601_v28 = vpack.c.bf16 %v894_v23, %v890_v22  ;;  %v972_v23 = vld [vmem:[#allocation8 + $0x2a8] sm:$0xff] }
 0x243   :  { %v538_v11 = vmul.f32 0.5, %v1720_v33  ;;  %1729 = vtanh.f32 %v511_v30  ;;  %v491_v44 = vadd.f32 %v490_v10, %v2180_v24  ;;  %v492_v46 = vpop.f32.mrb[13].mxu1  ;;  %635 = vmatprep.mubr.f32.mxu0 %v552_v1  ;;  %v1539_v30 = vpack.c.bf16 %v891_v62, %v887_v27  ;;  %v896_v1 = vld [vmem:[#allocation8 + $0x48] sm:$0xff]  ;;  %v899_v10 = vld [vmem:[#allocation8 + $0x60] sm:$0xff] }
 0x244   :  { %1731 = vtanh.f32 %v512_v37  ;;  %v493_v53 = vadd.f32 %v492_v46, %v2183_v25  ;;  %636 = vmatmul.mubr.f32.gmra.mrb[18].mxu0 %v551_v42  ;;  %v553_v48 = vadd.f32 0.5, %v537_v36  ;;  %1538 = vmatprep.subr.bf16.mxu0 %v1537_v56  ;;  %v900_v33 = vld [vmem:[#allocation8 + $0x68] sm:$0xff]  ;;  %v895_v37 = vld [vmem:[#allocation8 + $0x40] sm:$0xff] }
 0x245   :  { %v1722_v17 = vpop.eup %1721  ;;  %v513_v34 = vmul.f32 0.5, %v491_v44  ;;  %v554_v18 = vadd.f32 0.5, %v538_v11  ;;  %1602 = vmatprep.subr.bf16.mxu1 %v1601_v28  ;;  %1540 = vmatpush1.bf16.msra.mxu0 %v1539_v30  ;;  %v1541_v36 = vpack.c.bf16 %v900_v33, %v896_v1  ;;  %v1543_v42 = vpack.c.bf16 %v899_v10, %v895_v37  ;;  %v904_v11 = vld [vmem:[#allocation8 + $0x88] sm:$0xff]  ;;  %v959_v55 = vld [vmem:[#allocation8 + $0x240] sm:$0xff] }
 0x246   :  { %v1724_v31 = vpop.eup %1723  ;;  %v539_v32 = vmul.f32 0.5, %v1722_v17  ;;  %v514_v40 = vmul.f32 0.5, %v493_v53  ;;  %v496_v41 = vpop.f32.mrb[14].mxu1  ;;  %v908_v44 = vld [vmem:[#allocation8 + $0xa8] sm:$0xff]  ;;  %v903_v53 = vld [vmem:[#allocation8 + $0x80] sm:$0xff] }
 0x247   :  { %v540_v49 = vmul.f32 0.5, %v1724_v31  ;;  %1733 = vtanh.f32 %v513_v34  ;;  %v497_v57 = vadd.f32 %v496_v41, %v2180_v24  ;;  %v498_v58 = vpop.f32.mrb[15].mxu1  ;;  %641 = vmatprep.mubr.f32.mxu0 %v554_v18  ;;  %1542 = vmatprep.subr.bf16.mxu0 %v1541_v36  ;;  %v1545_v46 = vpack.c.bf16 %v908_v44, %v904_v11  ;;  %v907_v17 = vld [vmem:[#allocation8 + $0xa0] sm:$0xff]  ;;  %v912_v18 = vld [vmem:[#allocation8 + $0xc8] sm:$0xff] }
 0x248   :  { %1735 = vtanh.f32 %v514_v40  ;;  %v499_v63 = vadd.f32 %v498_v58, %v2183_v25  ;;  %642 = vmatmul.mubr.f32.gmra.mrb[20].mxu0 %v553_v48  ;;  %v555_v29 = vadd.f32 0.5, %v539_v32  ;;  %v1547_v34 = vpack.c.bf16 %v907_v17, %v903_v53  ;;  %v916_v31 = vld [vmem:[#allocation8 + $0xe8] sm:$0xff]  ;;  %v911_v40 = vld [vmem:[#allocation8 + $0xc0] sm:$0xff] }
 0x249   :  { %v1726_v5 = vpop.eup %1725  ;;  %v515_v8 = vmul.f32 0.5, %v497_v57  ;;  %v556_v13 = vadd.f32 0.5, %v540_v49  ;;  %1544 = vmatpush1.bf16.msra.mxu0 %v1543_v42  ;;  %v1549_v32 = vpack.c.bf16 %v916_v31, %v912_v18  ;;  %v915_v41 = vld [vmem:[#allocation8 + $0xe0] sm:$0xff]  ;;  %v920_v48 = vld [vmem:[#allocation8 + $0x108] sm:$0xff] }
 0x24a   :  { %v1728_v16 = vpop.eup %1727  ;;  %v541_v21 = vmul.f32 0.5, %v1726_v5  ;;  %v516_v26 = vmul.f32 0.5, %v499_v63  ;;  %1546 = vmatprep.subr.bf16.mxu0 %v1545_v46  ;;  %v924_v49 = vld [vmem:[#allocation8 + $0x128] sm:$0xff]  ;;  %v1551_v57 = vpack.c.bf16 %v915_v41, %v911_v40  ;;  %v919_v63 = vld [vmem:[#allocation8 + $0x100] sm:$0xff] }
 0x24b   :  { %v542_v35 = vmul.f32 0.5, %v1728_v16  ;;  %1737 = vtanh.f32 %v515_v8  ;;  %647 = vmatprep.mubr.f32.mxu0 %v556_v13  ;;  %v1553_v58 = vpack.c.bf16 %v924_v49, %v920_v48  ;;  %v923_v5 = vld [vmem:[#allocation8 + $0x120] sm:$0xff]  ;;  %v928_v8 = vld [vmem:[#allocation8 + $0x148] sm:$0xff] }
 0x24c   :  { %1739 = vtanh.f32 %v516_v26  ;;  %648 = vmatmul.mubr.f32.gmra.mrb[22].mxu0 %v555_v29  ;;  %v557_v60 = vadd.f32 0.5, %v541_v21  ;;  %v932_v13 = vld [vmem:[#allocation8 + $0x168] sm:$0xff]  ;;  %v1555_v16 = vpack.c.bf16 %v923_v5, %v919_v63  ;;  %v927_v26 = vld [vmem:[#allocation8 + $0x140] sm:$0xff] }
 0x24d   :  { %v1730_v39 = vpop.eup %1729  ;;  %v558_v45 = vadd.f32 0.5, %v542_v35  ;;  %1548 = vmatpush1.bf16.msra.mxu0 %v1547_v34  ;;  %v1557_v21 = vpack.c.bf16 %v932_v13, %v928_v8  ;;  %v931_v29 = vld [vmem:[#allocation8 + $0x160] sm:$0xff]  ;;  %v936_v35 = vld [vmem:[#allocation8 + $0x188] sm:$0xff]  ;;  %v889_v8 = vld [vmem:[#allocation8 + $0x10] sm:$0xff] }
 0x24e   :  { %v1732_v59 = vpop.eup %1731  ;;  %v543_v38 = vmul.f32 0.5, %v1730_v39  ;;  %1550 = vmatprep.subr.bf16.mxu0 %v1549_v32  ;;  %v940_v39 = vld [vmem:[#allocation8 + $0x1a8] sm:$0xff]  ;;  %v963_v22 = vld [vmem:[#allocation8 + $0x260] sm:$0xff]  ;;  %v893_v13 = vld [vmem:[#allocation8 + $0x30] sm:$0xff] }
 0x24f   :  { %v544_v61 = vmul.f32 0.5, %v1732_v59  ;;  %653 = vmatprep.mubr.f32.mxu0 %v558_v45  ;;  %v1559_v45 = vpack.c.bf16 %v931_v29, %v927_v26  ;;  %v1561_v59 = vpack.c.bf16 %v940_v39, %v936_v35  ;;  %v968_v56 = vld [vmem:[#allocation8 + $0x288] sm:$0xff]  ;;  %v1575_v27 = vpack.c.bf16 %v963_v22, %v959_v55  ;;  %v967_v28 = vld [vmem:[#allocation8 + $0x280] sm:$0xff]  ;;  %v902_v26 = vld [vmem:[#allocation8 + $0x78] sm:$0xff] }
 0x250   :  { %654 = vmatmul.mubr.f32.gmra.mrb[24].mxu0 %v557_v60  ;;  %v559_v4 = vadd.f32 0.5, %v543_v38  ;;  %v935_v38 = vld [vmem:[#allocation8 + $0x180] sm:$0xff]  ;;  %v1577_v62 = vpack.c.bf16 %v972_v23, %v968_v56  ;;  %v976_v1 = vld [vmem:[#allocation8 + $0x2c8] sm:$0xff]  ;;  %v909_v55 = vld [vmem:[#allocation8 + $0xb0] sm:$0xff] }
 0x251   :  { %v1734_v2 = vpop.eup %1733  ;;  %v560_v3 = vadd.f32 0.5, %v544_v61  ;;  %1552 = vmatpush1.bf16.msra.mxu0 %v1551_v57  ;;  %v939_v60 = vld [vmem:[#allocation8 + $0x1a0] sm:$0xff]  ;;  %v944_v61 = vld [vmem:[#allocation8 + $0x1c8] sm:$0xff]  ;;  %v914_v23 = vld [vmem:[#allocation8 + $0xd8] sm:$0xff] }
 0x252   :  { %v1736_v43 = vpop.eup %1735  ;;  %v545_v0 = vmul.f32 0.5, %v1734_v2  ;;  %1554 = vmatprep.subr.bf16.mxu0 %v1553_v58  ;;  %v948_v2 = vld [vmem:[#allocation8 + $0x1e8] sm:$0xff]  ;;  %v971_v30 = vld [vmem:[#allocation8 + $0x2a0] sm:$0xff] }
 0x253   :  { %v546_v6 = vmul.f32 0.5, %v1736_v43  ;;  %659 = vmatprep.mubr.f32.mxu0 %v560_v3  ;;  %v1563_v3 = vpack.c.bf16 %v939_v60, %v935_v38  ;;  %v1565_v43 = vpack.c.bf16 %v948_v2, %v944_v61  ;;  %v980_v33 = vld [vmem:[#allocation8 + $0x2e8] sm:$0xff]  ;;  %v1579_v36 = vpack.c.bf16 %v971_v30, %v967_v28  ;;  %v975_v10 = vld [vmem:[#allocation8 + $0x2c0] sm:$0xff]  ;;  %v897_v2 = vld [vmem:[#allocation8 + $0x50] sm:$0xff] }
 0x254   :  { %660 = vmatmul.mubr.f32.gmra.mrb[26].mxu0 %v559_v4  ;;  %v561_v14 = vadd.f32 0.5, %v545_v0  ;;  %v943_v0 = vld [vmem:[#allocation8 + $0x1c0] sm:$0xff]  ;;  %v1581_v37 = vpack.c.bf16 %v980_v33, %v976_v1  ;;  %v984_v11 = vld [vmem:[#allocation8 + $0x308] sm:$0xff] }
 0x255   :  { %v1738_v7 = vpop.eup %1737  ;;  %v562_v9 = vadd.f32 0.5, %v546_v6  ;;  %1556 = vmatpush1.bf16.msra.mxu0 %v1555_v16  ;;  %v947_v4 = vld [vmem:[#allocation8 + $0x1e0] sm:$0xff]  ;;  %v952_v6 = vld [vmem:[#allocation8 + $0x208] sm:$0xff] }
 0x256   :  { %v1740_v12 = vpop.eup %1739  ;;  %v547_v50 = vmul.f32 0.5, %v1738_v7  ;;  %1558 = vmatprep.subr.bf16.mxu0 %v1557_v21  ;;  %v956_v7 = vld [vmem:[#allocation8 + $0x228] sm:$0xff]  ;;  %v979_v42 = vld [vmem:[#allocation8 + $0x2e0] sm:$0xff]  ;;  %v898_v21 = vld [vmem:[#allocation8 + $0x58] sm:$0xff] }
 0x257   :  { %v548_v15 = vmul.f32 0.5, %v1740_v12  ;;  %665 = vmatprep.mubr.f32.mxu0 %v562_v9  ;;  %v1567_v9 = vpack.c.bf16 %v947_v4, %v943_v0  ;;  %v1569_v12 = vpack.c.bf16 %v956_v7, %v952_v6  ;;  %v988_v44 = vld [vmem:[#allocation8 + $0x328] sm:$0xff]  ;;  %v1583_v46 = vpack.c.bf16 %v979_v42, %v975_v10  ;;  %v983_v17 = vld [vmem:[#allocation8 + $0x300] sm:$0xff]  ;;  %v906_v4 = vld [vmem:[#allocation8 + $0x98] sm:$0xff] }
 0x258   :  { %666 = vmatmul.mubr.f32.gmra.mrb[28].mxu0 %v561_v14  ;;  %v563_v20 = vadd.f32 0.5, %v547_v50  ;;  %v951_v50 = vld [vmem:[#allocation8 + $0x200] sm:$0xff]  ;;  %v1585_v53 = vpack.c.bf16 %v988_v44, %v984_v11  ;;  %v992_v18 = vld [vmem:[#allocation8 + $0x348] sm:$0xff]  ;;  %v1605_v61 = vpack.c.bf16 %v902_v26, %v898_v21  ;;  %v910_v6 = vld [vmem:[#allocation8 + $0xb8] sm:$0xff] }
 0x259   :  { %v564_v19 = vadd.f32 0.5, %v548_v15  ;;  %1560 = vmatpush1.bf16.msra.mxu0 %v1559_v45  ;;  %v955_v14 = vld [vmem:[#allocation8 + $0x220] sm:$0xff]  ;;  %v960_v15 = vld [vmem:[#allocation8 + $0x248] sm:$0xff]  ;;  %v913_v42 = vld [vmem:[#allocation8 + $0xd0] sm:$0xff] }
 0x25a   :  { %1562 = vmatprep.subr.bf16.mxu0 %v1561_v59  ;;  %v987_v34 = vld [vmem:[#allocation8 + $0x320] sm:$0xff]  ;;  %v996_v31 = vld [vmem:[#allocation8 + $0x368] sm:$0xff]  ;;  %v1603_v59 = vpack.c.bf16 %v893_v13, %v889_v8  ;;  %v917_v11 = vld [vmem:[#allocation8 + $0xf0] sm:$0xff] }
 0x25b   :  { %671 = vmatprep.mubr.f32.mxu0 %v564_v19  ;;  %v964_v19 = vld [vmem:[#allocation8 + $0x268] sm:$0xff]  ;;  %v1587_v32 = vpack.c.bf16 %v987_v34, %v983_v17  ;;  %v1589_v40 = vpack.c.bf16 %v996_v31, %v992_v18  ;;  %v991_v41 = vld [vmem:[#allocation8 + $0x340] sm:$0xff]  ;;  %v926_v17 = vld [vmem:[#allocation8 + $0x138] sm:$0xff] }
 0x25c   :  { %672 = vmatmul.mubr.f32.gmra.mrb[30].mxu0 %v563_v20  ;;  %v1571_v20 = vpack.c.bf16 %v955_v14, %v951_v50  ;;  %v1573_v52 = vpack.c.bf16 %v964_v19, %v960_v15  ;;  %v995_v48 = vld [vmem:[#allocation8 + $0x360] sm:$0xff]  ;;  %v930_v8 = vld [vmem:[#allocation8 + $0x158] sm:$0xff] }
 0x25d   :  { %1564 = vmatpush1.bf16.msra.mxu0 %v1563_v3  ;;  %v1591_v49 = vpack.c.bf16 %v995_v48, %v991_v41  ;;  %v901_v3 = vld [vmem:[#allocation8 + $0x70] sm:$0xff]  ;;  %v934_v13 = vld [vmem:[#allocation8 + $0x178] sm:$0xff] }
 0x25e   :  { %1566 = vmatprep.subr.bf16.mxu0 %v1565_v43  ;;  %v1607_v14 = vpack.c.bf16 %v901_v3, %v897_v2  ;;  %v938_v3 = vld [vmem:[#allocation8 + $0x198] sm:$0xff] }
 0x261   :  { %1568 = vmatpush1.bf16.msra.mxu0 %v1567_v9 }
 0x262   :  { %1570 = vmatprep.subr.bf16.mxu0 %v1569_v12 }
 0x265   :  { %1572 = vmatpush1.bf16.msra.mxu0 %v1571_v20  ;;  %v1609_v20 = vpack.c.bf16 %v910_v6, %v906_v4 }
 0x266   :  { %1574 = vmatprep.subr.bf16.mxu0 %v1573_v52  ;;  %v905_v52 = vld [vmem:[#allocation8 + $0x90] sm:$0xff] }
 0x267   :  { %v1611_v33 = vpack.c.bf16 %v909_v55, %v905_v52  ;;  %v946_v55 = vld [vmem:[#allocation8 + $0x1d8] sm:$0xff] }
 0x269   :  { %1576 = vmatpush1.bf16.msra.mxu0 %v1575_v27  ;;  %v918_v27 = vld [vmem:[#allocation8 + $0xf8] sm:$0xff] }
 0x26a   :  { %1578 = vmatprep.subr.bf16.mxu0 %v1577_v62  ;;  %v1613_v10 = vpack.c.bf16 %v918_v27, %v914_v23 }
 0x26d   :  { %1580 = vmatpush1.bf16.msra.mxu0 %v1579_v36 }
 0x26e   :  { %1582 = vmatprep.subr.bf16.mxu0 %v1581_v37 }
 0x271   :  { %1584 = vmatpush1.bf16.msra.mxu0 %v1583_v46 }
 0x272   :  { %1586 = vmatprep.subr.bf16.mxu0 %v1585_v53  ;;  %v922_v53 = vld [vmem:[#allocation8 + $0x118] sm:$0xff] }
 0x275   :  { %1588 = vmatpush1.bf16.msra.mxu0 %v1587_v32 }
 0x276   :  { %1590 = vmatprep.subr.bf16.mxu0 %v1589_v40  ;;  %v1615_v40 = vpack.c.bf16 %v917_v11, %v913_v42  ;;  %v954_v11 = vld [vmem:[#allocation8 + $0x218] sm:$0xff] }
 0x279   :  { %1592 = vmatpush1.bf16.msra.mxu0 %v1591_v49  ;;  %v1617_v49 = vpack.c.bf16 %v926_v17, %v922_v53 }
 0x313   :  { %v631_v57 = vpop.f32.mrb[16].mxu0 }
 0x314   :  { %v632_v58 = vadd.f32 %v631_v57, %v2180_v24  ;;  %v633_v63 = vpop.f32.mrb[17].mxu0  ;;  %v921_v57 = vld [vmem:[#allocation8 + $0x110] sm:$0xff] }
 0x315   :  { %v634_v5 = vadd.f32 %v633_v63, %v2183_v25 }
 0x316   :  { %v694_v16 = vmul.f32 0.2, %v632_v58  ;;  %vm678_vm0 = vcmp.ge.f32.partialorder %v632_v58, 0.0 }
 0x317   :  { %v695_v29 = vmul.f32 0.2, %v634_v5  ;;  %v637_v35 = vpop.f32.mrb[18].mxu0  ;;  %vm679_vm1 = vcmp.ge.f32.partialorder %v634_v5, 0.0 }
 0x318   :  { %v638_v39 = vadd.f32 %v637_v35, %v2180_v24  ;;  %v639_v45 = vpop.f32.mrb[19].mxu0  ;;  %v710_v43 = vsel %vm678_vm0, %v632_v58, %v694_v16  ;;  %v925_v58 = vld [vmem:[#allocation8 + $0x130] sm:$0xff] }
 0x319   :  { %v640_v38 = vadd.f32 %v639_v45, %v2183_v25  ;;  %v711_v60 = vsel %vm679_vm1, %v634_v5, %v695_v29  ;;  %v1619_v35 = vpack.c.bf16 %v925_v58, %v921_v57  ;;  %v961_v57 = vld [vmem:[#allocation8 + $0x250] sm:$0xff] }
 0x31a   :  { %v696_v0 = vmul.f32 0.2, %v638_v39  ;;  %790 = vmatprep.mubr.f32.mxu1 %v711_v60  ;;  %vm680_vm3 = vcmp.ge.f32.partialorder %v638_v39, 0.0  ;;  %v933_v60 = vld [vmem:[#allocation8 + $0x170] sm:$0xff] }
 0x31b   :  { %v697_v7 = vmul.f32 0.2, %v640_v38  ;;  %v643_v9 = vpop.f32.mrb[20].mxu0  ;;  %791 = vmatmul.mubr.f32.vlgmr.msra.gmra.mrb[16].mxu1 %v710_v43  ;;  %vm681_vm2 = vcmp.ge.f32.partialorder %v640_v38, 0.0  ;;  %v942_v43 = vld [vmem:[#allocation8 + $0x1b8] sm:$0xff]  ;;  %v965_v58 = vld [vmem:[#allocation8 + $0x270] sm:$0xff] }
 0x31c   :  { %v644_v12 = vadd.f32 %v643_v9, %v2180_v24  ;;  %v645_v50 = vpop.f32.mrb[21].mxu0  ;;  %1604 = vmatpush1.bf16.msra.mxu1 %v1603_v59  ;;  %v712_v56 = vsel %vm680_vm3, %v638_v39, %v696_v0  ;;  %v1621_v59 = vpack.c.bf16 %v934_v13, %v930_v8  ;;  %v1639_v8 = vpack.c.bf16 %v965_v58, %v961_v57 }
 0x31d   :  { %v646_v15 = vadd.f32 %v645_v50, %v2183_v25  ;;  %v713_v19 = vsel %vm681_vm2, %v640_v38, %v697_v7  ;;  %1606 = vmatprep.subr.bf16.mxu1 %v1605_v61  ;;  %v929_v38 = vld [vmem:[#allocation8 + $0x150] sm:$0xff] }
 0x31e   :  { %v698_v22 = vmul.f32 0.2, %v644_v12  ;;  %796 = vmatprep.mubr.f32.mxu1 %v713_v19  ;;  %vm682_vm5 = vcmp.ge.f32.partialorder %v644_v12, 0.0  ;;  %v1623_v9 = vpack.c.bf16 %v933_v60, %v929_v38  ;;  %v941_v19 = vld [vmem:[#allocation8 + $0x1b0] sm:$0xff]  ;;  %v986_v38 = vld [vmem:[#allocation8 + $0x318] sm:$0xff] }
 0x31f   :  { %v699_v62 = vmul.f32 0.2, %v646_v15  ;;  %v649_v28 = vpop.f32.mrb[22].mxu0  ;;  %797 = vmatmul.mubr.f32.gmra.mrb[18].mxu1 %v712_v56  ;;  %vm683_vm4 = vcmp.ge.f32.partialorder %v646_v15, 0.0  ;;  %v990_v60 = vld [vmem:[#allocation8 + $0x338] sm:$0xff] }
 0x320   :  { %v650_v30 = vadd.f32 %v649_v28, %v2180_v24  ;;  %v651_v1 = vpop.f32.mrb[23].mxu0  ;;  %1608 = vmatpush1.bf16.msra.mxu1 %v1607_v14  ;;  %v714_v46 = vsel %vm682_vm5, %v644_v12, %v698_v22  ;;  %v1625_v14 = vpack.c.bf16 %v942_v43, %v938_v3  ;;  %v950_v22 = vld [vmem:[#allocation8 + $0x1f8] sm:$0xff]  ;;  %v985_v3 = vld [vmem:[#allocation8 + $0x310] sm:$0xff] }
 0x321   :  { %v652_v36 = vadd.f32 %v651_v1, %v2183_v25  ;;  %v715_v37 = vsel %vm683_vm4, %v646_v15, %v699_v62  ;;  %1610 = vmatprep.subr.bf16.mxu1 %v1609_v20  ;;  %v937_v15 = vld [vmem:[#allocation8 + $0x190] sm:$0xff] }
 0x322   :  { %v700_v44 = vmul.f32 0.2, %v650_v30  ;;  %802 = vmatprep.mubr.f32.mxu1 %v715_v37  ;;  %vm684_vm7 = vcmp.ge.f32.partialorder %v650_v30, 0.0  ;;  %v1627_v28 = vpack.c.bf16 %v941_v19, %v937_v15  ;;  %v949_v37 = vld [vmem:[#allocation8 + $0x1f0] sm:$0xff]  ;;  %v1004_v15 = vld [vmem:[#allocation8 + $0x3a8] sm:$0xff]  ;;  %v1002_v19 = vld [vmem:[#allocation8 + $0x398] sm:$0xff] }
 0x323   :  { %v701_v34 = vmul.f32 0.2, %v652_v36  ;;  %v655_v18 = vpop.f32.mrb[24].mxu0  ;;  %803 = vmatmul.mubr.f32.gmra.mrb[20].mxu1 %v714_v46  ;;  %vm685_vm6 = vcmp.ge.f32.partialorder %v652_v36, 0.0  ;;  %v989_v43 = vld [vmem:[#allocation8 + $0x330] sm:$0xff] }
 0x324   :  { %v656_v31 = vadd.f32 %v655_v18, %v2180_v24  ;;  %v657_v32 = vpop.f32.mrb[25].mxu0  ;;  %1612 = vmatpush1.bf16.msra.mxu1 %v1611_v33  ;;  %v716_v5 = vsel %vm684_vm7, %v650_v30, %v700_v44  ;;  %v1629_v33 = vpack.c.bf16 %v950_v22, %v946_v55  ;;  %v958_v44 = vld [vmem:[#allocation8 + $0x238] sm:$0xff]  ;;  %v953_v18 = vld [vmem:[#allocation8 + $0x210] sm:$0xff]  ;;  %v999_v55 = vld [vmem:[#allocation8 + $0x380] sm:$0xff] }
 0x325   :  { %v658_v41 = vadd.f32 %v657_v32, %v2183_v25  ;;  %v717_v48 = vsel %vm685_vm6, %v652_v36, %v701_v34  ;;  %1614 = vmatprep.subr.bf16.mxu1 %v1613_v10  ;;  %v945_v36 = vld [vmem:[#allocation8 + $0x1d0] sm:$0xff]  ;;  %v1633_v34 = vpack.c.bf16 %v958_v44, %v954_v11  ;;  %v1003_v22 = vld [vmem:[#allocation8 + $0x3a0] sm:$0xff] }
 0x326   :  { %v702_v63 = vmul.f32 0.2, %v656_v31  ;;  %808 = vmatprep.mubr.f32.mxu1 %v717_v48  ;;  %vm686_vm9 = vcmp.ge.f32.partialorder %v656_v31, 0.0  ;;  %v1631_v53 = vpack.c.bf16 %v949_v37, %v945_v36  ;;  %v1014_v37 = vld [vmem:[#allocation8 + $0x3f8] sm:$0xff] }
 0x327   :  { %v703_v16 = vmul.f32 0.2, %v658_v41  ;;  %v661_v21 = vpop.f32.mrb[26].mxu0  ;;  %809 = vmatmul.mubr.f32.gmra.mrb[22].mxu1 %v716_v5  ;;  %vm687_vm8 = vcmp.ge.f32.partialorder %v658_v41, 0.0  ;;  %v974_v5 = vld [vmem:[#allocation8 + $0x2b8] sm:$0xff] }
 0x328   :  { %v662_v26 = vadd.f32 %v661_v21, %v2180_v24  ;;  %v663_v29 = vpop.f32.mrb[27].mxu0  ;;  %1616 = vmatpush1.bf16.msra.mxu1 %v1615_v40  ;;  %v718_v2 = vsel %vm686_vm9, %v656_v31, %v702_v63  ;;  %v957_v31 = vld [vmem:[#allocation8 + $0x230] sm:$0xff]  ;;  %v962_v40 = vld [vmem:[#allocation8 + $0x258] sm:$0xff] }
 0x329   :  { %v664_v39 = vadd.f32 %v663_v29, %v2183_v25  ;;  %v719_v45 = vsel %vm687_vm8, %v658_v41, %v703_v16  ;;  %1618 = vmatprep.subr.bf16.mxu1 %v1617_v49  ;;  %v966_v41 = vld [vmem:[#allocation8 + $0x278] sm:$0xff]  ;;  %v1635_v48 = vpack.c.bf16 %v957_v31, %v953_v18  ;;  %v969_v16 = vld [vmem:[#allocation8 + $0x290] sm:$0xff] }
 0x32a   :  { %v704_v61 = vmul.f32 0.2, %v662_v26  ;;  %814 = vmatprep.mubr.f32.mxu1 %v719_v45  ;;  %vm688_vm11 = vcmp.ge.f32.partialorder %v662_v26, 0.0  ;;  %v1637_v49 = vpack.c.bf16 %v966_v41, %v962_v40  ;;  %v970_v63 = vld [vmem:[#allocation8 + $0x298] sm:$0xff]  ;;  %v973_v21 = vld [vmem:[#allocation8 + $0x2b0] sm:$0xff] }
 0x32b   :  { %v705_v0 = vmul.f32 0.2, %v664_v39  ;;  %v667_v4 = vpop.f32.mrb[28].mxu0  ;;  %815 = vmatmul.mubr.f32.gmra.mrb[24].mxu1 %v718_v2  ;;  %vm689_vm10 = vcmp.ge.f32.partialorder %v664_v39, 0.0  ;;  %v1641_v13 = vpack.c.bf16 %v974_v5, %v970_v63  ;;  %v982_v29 = vld [vmem:[#allocation8 + $0x2f8] sm:$0xff]  ;;  %v977_v45 = vld [vmem:[#allocation8 + $0x2d0] sm:$0xff]  ;;  %v1649_v2 = vpack.c.bf16 %v990_v60, %v986_v38 }
 0x32c   :  { %v668_v6 = vadd.f32 %v667_v4, %v2180_v24  ;;  %v669_v7 = vpop.f32.mrb[29].mxu0  ;;  %1620 = vmatpush1.bf16.msra.mxu1 %v1619_v35  ;;  %v720_v52 = vsel %vm688_vm11, %v662_v26, %v704_v61  ;;  %v978_v26 = vld [vmem:[#allocation8 + $0x2d8] sm:$0xff]  ;;  %v1643_v35 = vpack.c.bf16 %v973_v21, %v969_v16 }
 0x32d   :  { %v670_v12 = vadd.f32 %v669_v7, %v2183_v25  ;;  %v721_v50 = vsel %vm689_vm10, %v664_v39, %v705_v0  ;;  %1622 = vmatprep.subr.bf16.mxu1 %v1621_v59  ;;  %v1645_v39 = vpack.c.bf16 %v982_v29, %v978_v26  ;;  %v981_v59 = vld [vmem:[#allocation8 + $0x2f0] sm:$0xff]  ;;  %v994_v0 = vld [vmem:[#allocation8 + $0x358] sm:$0xff] }
 0x32e   :  { %v706_v20 = vmul.f32 0.2, %v668_v6  ;;  %820 = vmatprep.mubr.f32.mxu1 %v721_v50  ;;  %vm690_vm13 = vcmp.ge.f32.partialorder %v668_v6, 0.0  ;;  %v1647_v61 = vpack.c.bf16 %v981_v59, %v977_v45  ;;  %v998_v4 = vld [vmem:[#allocation8 + $0x378] sm:$0xff] }
 0x32f   :  { %v707_v56 = vmul.f32 0.2, %v670_v12  ;;  %v673_v23 = vpop.f32.mrb[30].mxu0  ;;  %821 = vmatmul.mubr.f32.gmra.mrb[26].mxu1 %v720_v52  ;;  %vm691_vm12 = vcmp.ge.f32.partialorder %v670_v12, 0.0  ;;  %v1653_v7 = vpack.c.bf16 %v998_v4, %v994_v0  ;;  %v1006_v52 = vld [vmem:[#allocation8 + $0x3b8] sm:$0xff] }
 0x330   :  { %v674_v27 = vadd.f32 %v673_v23, %v2180_v24  ;;  %v675_v62 = vpop.f32.mrb[31].mxu0  ;;  %1624 = vmatpush1.bf16.msra.mxu1 %v1623_v9  ;;  %v722_v42 = vsel %vm690_vm13, %v668_v6, %v706_v20  ;;  %v1651_v6 = vpack.c.bf16 %v989_v43, %v985_v3  ;;  %v993_v9 = vld [vmem:[#allocation8 + $0x350] sm:$0xff]  ;;  %v1595_v23 = vpack.c.bf16 %v1003_v22, %v999_v55 }
 0x331   :  { %v676_v30 = vadd.f32 %v675_v62, %v2183_v25  ;;  %v723_v1 = vsel %vm691_vm12, %v670_v12, %v707_v56  ;;  %1626 = vmatprep.subr.bf16.mxu1 %v1625_v14  ;;  %v997_v12 = vld [vmem:[#allocation8 + $0x370] sm:$0xff]  ;;  %v1000_v14 = vld [vmem:[#allocation8 + $0x388] sm:$0xff]  ;;  %v1657_v56 = vpack.c.bf16 %v1006_v52, %v1002_v19 }
 0x332   :  { %v708_v10 = vmul.f32 0.2, %v674_v27  ;;  %826 = vmatprep.mubr.f32.mxu1 %v723_v1  ;;  %vm692_vm15 = vcmp.ge.f32.partialorder %v674_v27, 0.0  ;;  %v1655_v50 = vpack.c.bf16 %v997_v12, %v993_v9  ;;  %v1593_v20 = vpack.c.bf16 %v1004_v15, %v1000_v14  ;;  %v1005_v62 = vld [vmem:[#allocation8 + $0x3b0] sm:$0xff]  ;;  %v1012_v1 = vld [vmem:[#allocation8 + $0x3e8] sm:$0xff] }
 0x333   :  { %v709_v46 = vmul.f32 0.2, %v676_v30  ;;  %827 = vmatmul.mubr.f32.gmra.mrb[28].mxu1 %v722_v42  ;;  %vm693_vm14 = vcmp.ge.f32.partialorder %v676_v30, 0.0  ;;  %v1011_v42 = vld [vmem:[#allocation8 + $0x3e0] sm:$0xff] }
 0x334   :  { %1628 = vmatpush1.bf16.msra.mxu1 %v1627_v28  ;;  %v724_v32 = vsel %vm692_vm15, %v674_v27, %v708_v10  ;;  %v1001_v27 = vld [vmem:[#allocation8 + $0x390] sm:$0xff]  ;;  %1594 = vmatprep.subr.bf16.mxu0 %v1593_v20  ;;  %v1007_v10 = vld [vmem:[#allocation8 + $0x3c0] sm:$0xff] }
 0x335   :  { %v725_v17 = vsel %vm693_vm14, %v676_v30, %v709_v46  ;;  %1630 = vmatprep.subr.bf16.mxu1 %v1629_v33  ;;  %v1659_v28 = vpack.c.bf16 %v1005_v62, %v1001_v27  ;;  %1596 = vmatpush1.bf16.msra.mxu0 %v1595_v23  ;;  %v1008_v30 = vld [vmem:[#allocation8 + $0x3c8] sm:$0xff]  ;;  %v1010_v33 = vld [vmem:[#allocation8 + $0x3d8] sm:$0xff]  ;;  %v1599_v44 = vpack.c.bf16 %v1011_v42, %v1007_v10  ;;  %v1009_v46 = vld [vmem:[#allocation8 + $0x3d0] sm:$0xff] }
 0x336   :  { %832 = vmatprep.mubr.f32.mxu1 %v725_v17  ;;  %v1597_v36 = vpack.c.bf16 %v1012_v1, %v1008_v30  ;;  %v1661_v11 = vpack.c.bf16 %v1014_v37, %v1010_v33 }
 0x337   :  { %833 = vmatmul.mubr.f32.gmra.mrb[30].mxu1 %v724_v32 }
 0x338   :  { %1632 = vmatpush1.bf16.msra.mxu1 %v1631_v53  ;;  %v1013_v53 = vld [vmem:[#allocation8 + $0x3f0] sm:$0xff]  ;;  %1598 = vmatprep.subr.bf16.mxu0 %v1597_v36 }
 0x339   :  { %1634 = vmatprep.subr.bf16.mxu1 %v1633_v34  ;;  %v1663_v17 = vpack.c.bf16 %v1013_v53, %v1009_v46  ;;  %1600 = vmatpush1.bf16.msra.mxu0 %v1599_v44 }
 0x33c   :  { %1636 = vmatpush1.bf16.msra.mxu1 %v1635_v48 }
 0x33d   :  { %1638 = vmatprep.subr.bf16.mxu1 %v1637_v49 }
 0x340   :  { %1640 = vmatpush1.bf16.msra.mxu1 %v1639_v8 }
 0x341   :  { %1642 = vmatprep.subr.bf16.mxu1 %v1641_v13 }
 0x344   :  { %1644 = vmatpush1.bf16.msra.mxu1 %v1643_v35 }
 0x345   :  { %1646 = vmatprep.subr.bf16.mxu1 %v1645_v39 }
 0x348   :  { %1648 = vmatpush1.bf16.msra.mxu1 %v1647_v61 }
 0x349   :  { %1650 = vmatprep.subr.bf16.mxu1 %v1649_v2 }
 0x34c   :  { %1652 = vmatpush1.bf16.msra.mxu1 %v1651_v6 }
 0x34d   :  { %1654 = vmatprep.subr.bf16.mxu1 %v1653_v7 }
 0x350   :  { %1656 = vmatpush1.bf16.msra.mxu1 %v1655_v50 }
 0x351   :  { %1658 = vmatprep.subr.bf16.mxu1 %v1657_v56 }
 0x354   :  { %1660 = vmatpush1.bf16.msra.mxu1 %v1659_v28 }
 0x355   :  { %1662 = vmatprep.subr.bf16.mxu1 %v1661_v11 }
 0x358   :  { %1664 = vmatpush1.bf16.msra.mxu1 %v1663_v17 }
 0x3ee   :  { %v792_v34 = vpop.f32.mrb[16].mxu1 }
 0x3ef   :  { %v793_v18 = vadd.f32 %v792_v34, %v2180_v24  ;;  %v794_v31 = vpop.f32.mrb[17].mxu1 }
 0x3f0   :  { %v795_v32 = vadd.f32 %v794_v31, %v2183_v25 }
 0x3f1   :  { %v855_v40 = vmul.f32 0.2, %v793_v18  ;;  %vm839_vm0 = vcmp.ge.f32.partialorder %v793_v18, 0.0 }
 0x3f2   :  { %v856_v41 = vmul.f32 0.2, %v795_v32  ;;  %v798_v48 = vpop.f32.mrb[18].mxu1  ;;  %vm840_vm1 = vcmp.ge.f32.partialorder %v795_v32, 0.0 }
 0x3f3   :  { %v799_v49 = vadd.f32 %v798_v48, %v2180_v24  ;;  %v800_v57 = vpop.f32.mrb[19].mxu1  ;;  %v871_v5 = vsel %vm839_vm0, %v793_v18, %v855_v40 }
 0x3f4   :  { %v801_v58 = vadd.f32 %v800_v57, %v2183_v25  ;;  %v872_v63 = vsel %vm840_vm1, %v795_v32, %v856_v41  ;;  %v1030_v41 = vsub.s32 3, %v2112_v47 }
 0x3f5   :  { %v857_v8 = vmul.f32 0.2, %v799_v49  ;;  %1100 = vmatprep.mubr.f32.mxu0 %v872_v63  ;;  %1213 = vmatprep.mubr.f32.mxu1 %v872_v63  ;;  %vm841_vm3 = vcmp.ge.f32.partialorder %v799_v49, 0.0 }
 0x3f6   :  { %v858_v13 = vmul.f32 0.2, %v801_v58  ;;  %v804_v16 = vpop.f32.mrb[20].mxu1  ;;  %1101 = vmatmul.mubr.f32.vlgmr.msra.gmra.mrb[32].mxu0 %v871_v5  ;;  %1214 = vmatmul.mubr.f32.vlgmr.msra.gmra.mrb[32].mxu1 %v871_v5  ;;  %vm842_vm2 = vcmp.ge.f32.partialorder %v801_v58, 0.0 }
 0x3f7   :  { %v805_v21 = vadd.f32 %v804_v16, %v2180_v24  ;;  %v806_v26 = vpop.f32.mrb[21].mxu1  ;;  %v873_v45 = vsel %vm841_vm3, %v799_v49, %v857_v8 }
 0x3f8   :  { %v807_v29 = vadd.f32 %v806_v26, %v2183_v25  ;;  %v874_v35 = vsel %vm842_vm2, %v801_v58, %v858_v13 }
 0x3f9   :  { %v859_v39 = vmul.f32 0.2, %v805_v21  ;;  %1106 = vmatprep.mubr.f32.mxu0 %v874_v35  ;;  %1219 = vmatprep.mubr.f32.mxu1 %v874_v35  ;;  %vm843_vm5 = vcmp.ge.f32.partialorder %v805_v21, 0.0 }
 0x3fa   :  { %v860_v59 = vmul.f32 0.2, %v807_v29  ;;  %v810_v38 = vpop.f32.mrb[22].mxu1  ;;  %1107 = vmatmul.mubr.f32.gmra.mrb[34].mxu0 %v873_v45  ;;  %1220 = vmatmul.mubr.f32.gmra.mrb[34].mxu1 %v873_v45  ;;  %vm844_vm4 = vcmp.ge.f32.partialorder %v807_v29, 0.0 }
 0x3fb   :  { %v811_v60 = vadd.f32 %v810_v38, %v2180_v24  ;;  %v812_v61 = vpop.f32.mrb[23].mxu1  ;;  %v875_v0 = vsel %vm843_vm5, %v805_v21, %v859_v39 }
 0x3fc   :  { %v813_v2 = vadd.f32 %v812_v61, %v2183_v25  ;;  %v876_v3 = vsel %vm844_vm4, %v807_v29, %v860_v59 }
 0x3fd   :  { %v861_v43 = vmul.f32 0.2, %v811_v60  ;;  %1112 = vmatprep.mubr.f32.mxu0 %v876_v3  ;;  %1225 = vmatprep.mubr.f32.mxu1 %v876_v3  ;;  %vm845_vm7 = vcmp.ge.f32.partialorder %v811_v60, 0.0 }
 0x3fe   :  { %v862_v4 = vmul.f32 0.2, %v813_v2  ;;  %v816_v6 = vpop.f32.mrb[24].mxu1  ;;  %1113 = vmatmul.mubr.f32.gmra.mrb[36].mxu0 %v875_v0  ;;  %1226 = vmatmul.mubr.f32.gmra.mrb[36].mxu1 %v875_v0  ;;  %vm846_vm6 = vcmp.ge.f32.partialorder %v813_v2, 0.0 }
 0x3ff   :  { %v817_v7 = vadd.f32 %v816_v6, %v2180_v24  ;;  %v818_v9 = vpop.f32.mrb[25].mxu1  ;;  %v877_v15 = vsel %vm845_vm7, %v811_v60, %v861_v43 }
 0x400   :  { %v819_v12 = vadd.f32 %v818_v9, %v2183_v25  ;;  %v878_v50 = vsel %vm846_vm6, %v813_v2, %v862_v4 }
 0x401   :  { %v863_v14 = vmul.f32 0.2, %v817_v7  ;;  %1118 = vmatprep.mubr.f32.mxu0 %v878_v50  ;;  %1231 = vmatprep.mubr.f32.mxu1 %v878_v50  ;;  %vm847_vm9 = vcmp.ge.f32.partialorder %v817_v7, 0.0 }
 0x402   :  { %v864_v19 = vmul.f32 0.2, %v819_v12  ;;  %v822_v20 = vpop.f32.mrb[26].mxu1  ;;  %1119 = vmatmul.mubr.f32.gmra.mrb[38].mxu0 %v877_v15  ;;  %1232 = vmatmul.mubr.f32.gmra.mrb[38].mxu1 %v877_v15  ;;  %vm848_vm8 = vcmp.ge.f32.partialorder %v819_v12, 0.0 }
 0x403   :  { %v823_v52 = vadd.f32 %v822_v20, %v2180_v24  ;;  %v824_v55 = vpop.f32.mrb[27].mxu1  ;;  %v879_v27 = vsel %vm847_vm9, %v817_v7, %v863_v14 }
 0x404   :  { %v825_v22 = vadd.f32 %v824_v55, %v2183_v25  ;;  %v880_v56 = vsel %vm848_vm8, %v819_v12, %v864_v19 }
 0x405   :  { %v865_v23 = vmul.f32 0.2, %v823_v52  ;;  %1124 = vmatprep.mubr.f32.mxu0 %v880_v56  ;;  %1237 = vmatprep.mubr.f32.mxu1 %v880_v56  ;;  %vm849_vm11 = vcmp.ge.f32.partialorder %v823_v52, 0.0 }
 0x406   :  { %v866_v62 = vmul.f32 0.2, %v825_v22  ;;  %v828_v28 = vpop.f32.mrb[28].mxu1  ;;  %1125 = vmatmul.mubr.f32.gmra.mrb[40].mxu0 %v879_v27  ;;  %1238 = vmatmul.mubr.f32.gmra.mrb[40].mxu1 %v879_v27  ;;  %vm850_vm10 = vcmp.ge.f32.partialorder %v825_v22, 0.0 }
 0x407   :  { %v829_v30 = vadd.f32 %v828_v28, %v2180_v24  ;;  %v830_v1 = vpop.f32.mrb[29].mxu1  ;;  %v881_v10 = vsel %vm849_vm11, %v823_v52, %v865_v23 }
 0x408   :  { %v831_v33 = vadd.f32 %v830_v1, %v2183_v25  ;;  %v882_v36 = vsel %vm850_vm10, %v825_v22, %v866_v62 }
 0x409   :  { %v867_v37 = vmul.f32 0.2, %v829_v30  ;;  %1130 = vmatprep.mubr.f32.mxu0 %v882_v36  ;;  %1243 = vmatprep.mubr.f32.mxu1 %v882_v36  ;;  %vm851_vm13 = vcmp.ge.f32.partialorder %v829_v30, 0.0 }
 0x40a   :  { %v868_v42 = vmul.f32 0.2, %v831_v33  ;;  %v834_v11 = vpop.f32.mrb[30].mxu1  ;;  %1131 = vmatmul.mubr.f32.gmra.mrb[42].mxu0 %v881_v10  ;;  %1244 = vmatmul.mubr.f32.gmra.mrb[42].mxu1 %v881_v10  ;;  %vm852_vm12 = vcmp.ge.f32.partialorder %v831_v33, 0.0 }
 0x40b   :  { %v835_v44 = vadd.f32 %v834_v11, %v2180_v24  ;;  %v836_v46 = vpop.f32.mrb[31].mxu1  ;;  %v883_v18 = vsel %vm851_vm13, %v829_v30, %v867_v37  ;;  %v1026_v24 = vsub.s32 2, %v2112_v47 }
 0x40c   :  { %v837_v53 = vadd.f32 %v836_v46, %v2183_v25  ;;  %v884_v17 = vsel %vm852_vm12, %v831_v33, %v868_v42  ;;  %v92_v25 = vld [vmem:[%s2301_s6] sm:$0xf]  ;;  %s1870_s6 = smov [#allocation10]  }
 0x40d   :  { %v869_v34 = vmul.f32 0.2, %v835_v44  ;;  %1136 = vmatprep.mubr.f32.mxu0 %v884_v17  ;;  %1249 = vmatprep.mubr.f32.mxu1 %v884_v17  ;;  %vm853_vm15 = vcmp.ge.f32.partialorder %v835_v44, 0.0  ;;  %v2239_v48 = vrot.slane %v92_v25, %v2115_v51  ;;  %v2241_v49 = vrot.slane %v92_v25, %v1026_v24  ;;  %s1299_s8 = sshll.u32 %s1870_s6, 4  ;;  %s1300_s8 = int_to_ptr.vmem [resolvable:$true] %s1299_s8 }
 0x40e   :  { %v870_v31 = vmul.f32 0.2, %v837_v53  ;;  %1137 = vmatmul.mubr.f32.gmra.mrb[44].mxu0 %v883_v18  ;;  %1250 = vmatmul.mubr.f32.gmra.mrb[44].mxu1 %v883_v18  ;;  %vm854_vm14 = vcmp.ge.f32.partialorder %v837_v53, 0.0  ;;  %v2244_v57 = vrot.slane %v92_v25, %v2121_v54  ;;  %v2246_v58 = vrot.slane %v92_v25, %v1030_v41  ;;  %s1829_s9 = scalar_lea.vmem %s1300_s8, 4096  ;;  %p1834_p5 = scmp.lt.s32.totalorder %s1300_s8, %s1300_s8 }
 0x40f   :  { %v885_v40 = vsel %vm853_vm15, %v835_v44, %v869_v34  ;;  %p1830_p4 = scmp.ne.s32.totalorder %s1300_s8, %s1829_s9  ;;  %p1835_p6 = scmp.lt.s32.totalorder %s1829_s9, %s1829_s9 }
 0x410   :  { %v886_v32 = vsel %vm854_vm14, %v837_v53, %v870_v31 }
 0x411   :  { %1142 = vmatprep.mubr.f32.mxu0 %v886_v32  ;;  %1255 = vmatprep.mubr.f32.mxu1 %v886_v32  ;;  %p1836_p7 = por %p1835_p6, %p1834_p5 }
 0x412   :  { %1143 = vmatmul.mubr.f32.gmra.mrb[46].mxu0 %v885_v40  ;;  %1256 = vmatmul.mubr.f32.gmra.mrb[46].mxu1 %v885_v40 }
 0x413   :  { %p1837_p8 = pnand %p1836_p7, %p1830_p4 }
 0x4c9   :  { %v1102_v63 = vpop.f32.mrb[32].mxu0  ;;  %v1215_v5 = vpop.f32.mrb[32].mxu1 }
 0x4ca   :  { %v1103_v8 = vadd.f32 %v1102_v63, %v2239_v48  ;;  %v1216_v13 = vadd.f32 %v1215_v5, %v2241_v49  ;;  %v1104_v16 = vpop.f32.mrb[33].mxu0  ;;  %v1217_v21 = vpop.f32.mrb[33].mxu1 }
 0x4cb   :  { %v1105_v47 = vadd.f32 %v1104_v16, %v2244_v57  ;;  %v1218_v51 = vadd.f32 %v1217_v21, %v2246_v58 }
 0x4cc   :  { %1262 = vst [vmem:[#allocation10] sm:$0xff] %v1103_v8  ;;  %1264 = vst [vmem:[#allocation10 + $0x10] sm:$0xff] %v1216_v13 }
 0x4cd   :  { %1263 = vst [vmem:[#allocation10 + $0x8] sm:$0xff] %v1105_v47  ;;  %1265 = vst [vmem:[#allocation10 + $0x18] sm:$0xff] %v1218_v51  ;;  %v1108_v54 = vpop.f32.mrb[34].mxu0  ;;  %v1221_v26 = vpop.f32.mrb[34].mxu1 }
 0x4ce   :  { %v1109_v29 = vadd.f32 %v1108_v54, %v2239_v48  ;;  %v1222_v35 = vadd.f32 %v1221_v26, %v2241_v49  ;;  %v1110_v39 = vpop.f32.mrb[35].mxu0  ;;  %v1223_v45 = vpop.f32.mrb[35].mxu1 }
 0x4cf   :  { %v1111_v59 = vadd.f32 %v1110_v39, %v2244_v57  ;;  %v1224_v38 = vadd.f32 %v1223_v45, %v2246_v58 }
 0x4d0   :  { %1266 = vst [vmem:[#allocation10 + $0x20] sm:$0xff] %v1109_v29  ;;  %1268 = vst [vmem:[#allocation10 + $0x30] sm:$0xff] %v1222_v35 }
 0x4d1   :  { %1267 = vst [vmem:[#allocation10 + $0x28] sm:$0xff] %v1111_v59  ;;  %1269 = vst [vmem:[#allocation10 + $0x38] sm:$0xff] %v1224_v38  ;;  %v1114_v60 = vpop.f32.mrb[36].mxu0  ;;  %v1227_v61 = vpop.f32.mrb[36].mxu1 }
 0x4d2   :  { %v1115_v2 = vadd.f32 %v1114_v60, %v2239_v48  ;;  %v1228_v3 = vadd.f32 %v1227_v61, %v2241_v49  ;;  %v1116_v43 = vpop.f32.mrb[37].mxu0  ;;  %v1229_v0 = vpop.f32.mrb[37].mxu1 }
 0x4d3   :  { %v1117_v4 = vadd.f32 %v1116_v43, %v2244_v57  ;;  %v1230_v6 = vadd.f32 %v1229_v0, %v2246_v58 }
 0x4d4   :  { %1270 = vst [vmem:[#allocation10 + $0x40] sm:$0xff] %v1115_v2  ;;  %1272 = vst [vmem:[#allocation10 + $0x50] sm:$0xff] %v1228_v3 }
 0x4d5   :  { %1271 = vst [vmem:[#allocation10 + $0x48] sm:$0xff] %v1117_v4  ;;  %1273 = vst [vmem:[#allocation10 + $0x58] sm:$0xff] %v1230_v6  ;;  %v1120_v7 = vpop.f32.mrb[38].mxu0  ;;  %v1233_v9 = vpop.f32.mrb[38].mxu1 }
 0x4d6   :  { %v1121_v12 = vadd.f32 %v1120_v7, %v2239_v48  ;;  %v1234_v50 = vadd.f32 %v1233_v9, %v2241_v49  ;;  %v1122_v14 = vpop.f32.mrb[39].mxu0  ;;  %v1235_v15 = vpop.f32.mrb[39].mxu1 }
 0x4d7   :  { %v1123_v19 = vadd.f32 %v1122_v14, %v2244_v57  ;;  %v1236_v20 = vadd.f32 %v1235_v15, %v2246_v58 }
 0x4d8   :  { %1274 = vst [vmem:[#allocation10 + $0x60] sm:$0xff] %v1121_v12  ;;  %1276 = vst [vmem:[#allocation10 + $0x70] sm:$0xff] %v1234_v50 }
 0x4d9   :  { %1275 = vst [vmem:[#allocation10 + $0x68] sm:$0xff] %v1123_v19  ;;  %1277 = vst [vmem:[#allocation10 + $0x78] sm:$0xff] %v1236_v20  ;;  %v1126_v52 = vpop.f32.mrb[40].mxu0  ;;  %v1239_v55 = vpop.f32.mrb[40].mxu1 }
 0x4da   :  { %v1127_v22 = vadd.f32 %v1126_v52, %v2239_v48  ;;  %v1240_v56 = vadd.f32 %v1239_v55, %v2241_v49  ;;  %v1128_v23 = vpop.f32.mrb[41].mxu0  ;;  %v1241_v27 = vpop.f32.mrb[41].mxu1 }
 0x4db   :  { %v1129_v62 = vadd.f32 %v1128_v23, %v2244_v57  ;;  %v1242_v28 = vadd.f32 %v1241_v27, %v2246_v58 }
 0x4dc   :  { %1278 = vst [vmem:[#allocation10 + $0x80] sm:$0xff] %v1127_v22  ;;  %1280 = vst [vmem:[#allocation10 + $0x90] sm:$0xff] %v1240_v56 }
 0x4dd   :  { %1279 = vst [vmem:[#allocation10 + $0x88] sm:$0xff] %v1129_v62  ;;  %1281 = vst [vmem:[#allocation10 + $0x98] sm:$0xff] %v1242_v28  ;;  %v1132_v30 = vpop.f32.mrb[42].mxu0  ;;  %v1245_v1 = vpop.f32.mrb[42].mxu1 }
 0x4de   :  { %v1133_v33 = vadd.f32 %v1132_v30, %v2239_v48  ;;  %v1246_v36 = vadd.f32 %v1245_v1, %v2241_v49  ;;  %v1134_v37 = vpop.f32.mrb[43].mxu0  ;;  %v1247_v10 = vpop.f32.mrb[43].mxu1 }
 0x4df   :  { %v1135_v42 = vadd.f32 %v1134_v37, %v2244_v57  ;;  %v1248_v11 = vadd.f32 %v1247_v10, %v2246_v58 }
 0x4e0   :  { %1282 = vst [vmem:[#allocation10 + $0xa0] sm:$0xff] %v1133_v33  ;;  %1284 = vst [vmem:[#allocation10 + $0xb0] sm:$0xff] %v1246_v36 }
 0x4e1   :  { %1283 = vst [vmem:[#allocation10 + $0xa8] sm:$0xff] %v1135_v42  ;;  %1285 = vst [vmem:[#allocation10 + $0xb8] sm:$0xff] %v1248_v11  ;;  %v1138_v44 = vpop.f32.mrb[44].mxu0  ;;  %v1251_v46 = vpop.f32.mrb[44].mxu1 }
 0x4e2   :  { %v1139_v53 = vadd.f32 %v1138_v44, %v2239_v48  ;;  %v1252_v17 = vadd.f32 %v1251_v46, %v2241_v49  ;;  %v1140_v34 = vpop.f32.mrb[45].mxu0  ;;  %v1253_v18 = vpop.f32.mrb[45].mxu1 }
 0x4e3   :  { %v1141_v31 = vadd.f32 %v1140_v34, %v2244_v57  ;;  %v1254_v32 = vadd.f32 %v1253_v18, %v2246_v58 }
 0x4e4   :  { %1286 = vst [vmem:[#allocation10 + $0xc0] sm:$0xff] %v1139_v53  ;;  %1288 = vst [vmem:[#allocation10 + $0xd0] sm:$0xff] %v1252_v17 }
 0x4e5   :  { %1287 = vst [vmem:[#allocation10 + $0xc8] sm:$0xff] %v1141_v31  ;;  %1289 = vst [vmem:[#allocation10 + $0xd8] sm:$0xff] %v1254_v32  ;;  %v1144_v40 = vpop.f32.mrb[46].mxu0  ;;  %v1257_v24 = vpop.f32.mrb[46].mxu1 }
 0x4e6   :  { %v1145_v25 = vadd.f32 %v1144_v40, %v2239_v48  ;;  %v1258_v41 = vadd.f32 %v1257_v24, %v2241_v49  ;;  %v1146_v63 = vpop.f32.mrb[47].mxu0  ;;  %v1259_v5 = vpop.f32.mrb[47].mxu1 }
 0x4e7   :  { %v1147_v8 = vadd.f32 %v1146_v63, %v2244_v57  ;;  %v1260_v13 = vadd.f32 %v1259_v5, %v2246_v58 }
 0x4e8   :  { %1290 = vst [vmem:[#allocation10 + $0xe0] sm:$0xff] %v1145_v25  ;;  %1292 = vst [vmem:[#allocation10 + $0xf0] sm:$0xff] %v1258_v41 }
 0x4e9   :  { %1291 = vst [vmem:[#allocation10 + $0xe8] sm:$0xff] %v1147_v8  ;;  %1293 = vst [vmem:[#allocation10 + $0xf8] sm:$0xff] %v1260_v13 }
 0x4ea   :  { %1840 = shalt.err (!%p1837_p8)
}
 0x4eb   :  { %s1841_s14 = scalar_lea.hbm %s2302_s7, 4096 }
 0x4ec   :  { %p1842_p9 = scmp.ne.s32.totalorder %s2302_s7, %s1841_s14  ;;  %p1845_p10 = scmp.lt.u32.totalorder %s1841_s14, %s2302_s7 }
 0x4ee   :  { %p1847_p11 = pnand %p1845_p10, %p1842_p9 }
 0x4f0   :  { %1850 = shalt.err (!%p1847_p11)
}
 0x4f1   :  { %1305 = dma.vmem_to_hbm [thread:$0]  %s1300_s8, 4096, %s2302_s7, [#allocation4], %s1867_s3, %s1867_s3, %s1868_s11  }
 0x4f2   :  { %1857 = dma.done.wait [#allocation4], 4096  }
 0x4f3   :  { %1858 = vsyncadd [#allocation4], 4294963200 }
 0x4f4   :  { %1309 = vsyncpa [#allocation3], 1 }
 0x4f5   :  { %1310 = vsyncpa [#allocation6], 1 }
 0x4f6   :  { %1311 = vsyncpa [#allocation9], 1 }
 0x4f7   :  { %1312 = vsyncpa [#allocation4], 1 }

</bundles_post_ra>
